<compile_context>
chip_gen: v6e
topology: v6e:2x2x1
jax: 0.10.0
libtpu: 0.0.40
codegen_flags: <defaults>
</compile_context>

<pallas_src>
import jax
import jax.numpy as jnp
from jax.experimental import pallas as pl
from jax.experimental.pallas import tpu as pltpu

D_MODEL = 32
N_HEADS = 4
HEAD_SIZE = D_MODEL // N_HEADS   # 8
CONTEXT = 8                      # == HEAD_SIZE for this module


def mha_kernel(x_ref, wqkv_ref, wo_ref, bo_ref, o_ref):
    Bt, T, D = x_ref.shape
    H = N_HEADS
    HT = H * T                                   # packed (head, key) lane axis = 32
    t_shift = (T - 1).bit_length()               # log2(T) = 3
    h_shift = (HEAD_SIZE - 1).bit_length()       # log2(head_size) = 3

    # ---- fused QKV projection (one big MXU matmul, bf16 operands) ----------
    xb = x_ref[...].reshape(Bt * T, D).astype(jnp.bfloat16)
    qkv = jnp.dot(xb, wqkv_ref[...], preferred_element_type=jnp.float32)  # (Bt*T, 3D) f32

    q = qkv[:, :D].reshape(Bt, T, D).astype(jnp.bfloat16)   # scale already folded into Wq
    k = qkv[:, D:2 * D].reshape(Bt, T, D)                   # f32
    v = qkv[:, 2 * D:].reshape(Bt, T, D)                    # f32

    # ---- block-diagonal head mask (HT, D): row j = h*T+s, col c = h*hs+d ----
    j_i = jax.lax.broadcasted_iota(jnp.int32, (HT, D), 0)
    c_i = jax.lax.broadcasted_iota(jnp.int32, (HT, D), 1)
    blk_f = (jnp.right_shift(j_i, t_shift) ==
             jnp.right_shift(c_i, h_shift)).astype(jnp.float32)           # (32, 32)

    # k_rows[b, j, c] = k[b, j%T, c] iff head(j)==head(c), else 0 (same for v):
    # per-sequence block-diagonal operands that collapse all 4 heads into one
    # 8x32x32 matmul for scores and one for PV.
    k_rows = (jnp.concatenate([k] * H, axis=1) * blk_f).astype(jnp.bfloat16)  # (Bt, HT, D)
    v_rows = (jnp.concatenate([v] * H, axis=1) * blk_f).astype(jnp.bfloat16)  # (Bt, HT, D)

    # ---- packed per-head causal scores: all heads side by side on lanes ----
    wei = jnp.einsum('btc,bjc->btj', q, k_rows,
                     preferred_element_type=jnp.float32)                  # (Bt, T, HT) f32

    t_i = jax.lax.broadcasted_iota(jnp.int32, (T, HT), 0)
    s_i = jnp.bitwise_and(jax.lax.broadcasted_iota(jnp.int32, (T, HT), 1), T - 1)
    causal = s_i <= t_i                                                   # (T, HT)
    wei = jnp.where(causal[None], wei, jnp.float32(-1e30))

    # ---- packed softmax (f32): one max / one exp over 32 dense lanes --------
    m = jnp.max(wei, axis=-1, keepdims=True)      # shared per-row max (segment-constant)
    e = jnp.exp(wei - m)                          # masked lanes underflow to exactly 0
    # TODO(synk): attention dropout omitted (eval-mode identity).

    # per-head denominators, broadcast to every lane of the segment via one
    # flat matmul against the block-diagonal mask (lane layout matches att's).
    denom = jnp.dot(e.reshape(Bt * T, HT), blk_f,
                    preferred_element_type=jnp.float32)                   # (Bt*T, D)

    # ---- PV product: head outputs come out lane-packed (= concat of heads) --
    att = jnp.einsum('btj,bjc->btc', e.astype(jnp.bfloat16), v_rows,
                     preferred_element_type=jnp.float32)                  # (Bt, T, D) f32
    att = att.reshape(Bt * T, D) * pl.reciprocal(denom, approx=True)

    # ---- single output projection + bias -----------------------------------
    out = jnp.dot(att.astype(jnp.bfloat16), wo_ref[...],
                  preferred_element_type=jnp.float32) + bo_ref[...]
    # TODO(synk): projection dropout omitted (eval-mode identity).
    o_ref[...] = out.reshape(Bt, T, D).astype(o_ref.dtype)


def prepare_params(raw):
    """One-time parameter prep: fold the reference's C**-0.5 scale (C = d_model)
    into Wq, fuse Q/K/V weights into one (D, 3D) matrix, and cast the matmul
    weights to bf16 (MXU-native); bias stays f32."""
    wq_scaled = raw["wq"] * (D_MODEL ** -0.5)
    wqkv = jnp.concatenate([wq_scaled, raw["wk"], raw["wv"]], axis=1)      # (D, 3D)
    return {
        "wqkv": wqkv.astype(jnp.bfloat16),
        "wo": raw["wo"].astype(jnp.bfloat16),
        "bo": raw["bo"].astype(jnp.float32),
    }


def multi_head_attention(x, params, block_b=128):
    """x: (B, T, D). `params` must come from prepare_params()."""
    B, T, D = x.shape
    # >= 2 grid steps when possible (v7x: both TensorCores busy) and a block
    # size that divides B (avoids fully-wasted padded work).
    nb = max(2, pl.cdiv(B, block_b)) if B > 1 else 1
    bt = pl.cdiv(B, nb)
    nb = pl.cdiv(B, bt)
    Bp = nb * bt
    xp = jnp.pad(x, ((0, Bp - B), (0, 0), (0, 0))) if Bp != B else x

    out = pl.pallas_call(
        mha_kernel,
        out_shape=jax.ShapeDtypeStruct((Bp, T, D), x.dtype),
        grid_spec=pltpu.PrefetchScalarGridSpec(
            num_scalar_prefetch=0,
            grid=(nb,),
            in_specs=[
                pl.BlockSpec((bt, T, D), lambda i: (i, 0, 0)),     # x block
                pl.BlockSpec((D, 3 * D), lambda i: (0, 0)),        # fused Wqkv (bf16)
                pl.BlockSpec((D, D), lambda i: (0, 0)),            # W proj (bf16)
                pl.BlockSpec((1, D), lambda i: (0, 0)),            # proj bias (f32)
            ],
            out_specs=pl.BlockSpec((bt, T, D), lambda i: (i, 0, 0)),
        ),
        compiler_params=pltpu.CompilerParams(
            dimension_semantics=("parallel",)),
    )(xp, params["wqkv"], params["wo"], params["bo"])
    return out[:B] if Bp != B else out


def init_params(key, d_model=D_MODEL):
    """PyTorch-equivalent init: per-head Q/K/V Linears (no bias) concatenated
    along the output dim, stored as (in, out) so the kernel does x @ W; output
    projection Linear(d_model, d_model) with bias."""
    keys = jax.random.split(key, 5)

    def uni(k, shape, fan_in):
        bound = 1.0 / jnp.sqrt(jnp.float32(fan_in))
        return jax.random.uniform(k, shape, jnp.float32, -bound, bound)

    return {
        "wq": uni(keys[0], (d_model, d_model), d_model),
        "wk": uni(keys[1], (d_model, d_model), d_model),
        "wv": uni(keys[2], (d_model, d_model), d_model),
        "wo": uni(keys[3], (d_model, d_model), d_model),
        "bo": uni(keys[4], (1, d_model), d_model),
    }


def mha_reference(x, raw_params):
    """Pure-JAX transcription of the PyTorch forward (eval mode), using the
    RAW f32 weights and the explicit C**-0.5 scale."""
    B, T, C = x.shape
    q = x @ raw_params["wq"]
    k = x @ raw_params["wk"]
    v = x @ raw_params["wv"]

    def heads(t):
        return t.reshape(B, T, N_HEADS, HEAD_SIZE).transpose(0, 2, 1, 3)

    qh, kh, vh = heads(q), heads(k), heads(v)          # (B, H, T, hs)
    wei = jnp.einsum('bhtd,bhsd->bhts', qh, kh) * (C ** -0.5)
    mask = jnp.tril(jnp.ones((T, T), bool))
    wei = jnp.where(mask, wei, -jnp.inf)
    wei = jax.nn.softmax(wei, axis=-1)
    att = jnp.einsum('bhts,bhsd->bhtd', wei, vh)
    att = att.transpose(0, 2, 1, 3).reshape(B, T, C)   # concat heads
    return att @ raw_params["wo"] + raw_params["bo"]


if __name__ == "__main__":
    key = jax.random.PRNGKey(0)
    k_x, k_p = jax.random.split(key)

    B, T, D = 32, CONTEXT, D_MODEL
    x = jax.random.normal(k_x, (B, T, D), jnp.float32)

    raw_params = init_params(k_p)
    params = prepare_params(raw_params)

    out = multi_head_attention(x, params)
    out = jax.block_until_ready(out)
    assert out.shape == (B, T, D) and out.dtype == jnp.float32

    ref = mha_reference(x, raw_params)
    max_err = float(jnp.max(jnp.abs(out - ref)))
    # bf16 MXU operands + approx reciprocal add ~1e-3..1e-2 absolute error;
    # real bugs (mask/packing/ordering) show up at >= 5e-2.
    assert max_err < 3e-2, f"max abs error {max_err}"
    print("KERNEL_OK")
</pallas_src>

<mosaic_0001>
module attributes {stable_mosaic.version = 11 : i64} {
  func.func @mha_kernel(%arg0: i32, %arg1: memref<16x8x32xf32, #tpu.memory_space<vmem>>, %arg2: memref<32x96xbf16, #tpu.memory_space<vmem>>, %arg3: memref<32x32xbf16, #tpu.memory_space<vmem>>, %arg4: memref<1x32xf32, #tpu.memory_space<vmem>>, %arg5: memref<16x8x32xf32, #tpu.memory_space<vmem>>) attributes {dimension_semantics = [#tpu.dimension_semantics<parallel>], iteration_bounds = array<i64: 2>, scalar_prefetch = 0 : i64, scratch_operands = 0 : i64, tpu.core_type = #tpu.core_type<tc>, window_params = [{transform_indices = @transform_0, window_bounds = array<i64: 16, 8, 32>}, {pipeline_mode = #tpu.pipeline_mode<synchronous>, transform_indices = @transform_1, window_bounds = array<i64: 32, 96>}, {pipeline_mode = #tpu.pipeline_mode<synchronous>, transform_indices = @transform_2, window_bounds = array<i64: 32, 32>}, {pipeline_mode = #tpu.pipeline_mode<synchronous>, transform_indices = @transform_3, window_bounds = array<i64: 1, 32>}, {transform_indices = @transform_4, window_bounds = array<i64: 16, 8, 32>}]} {
    %c0 = arith.constant 0 : index
    %c0_0 = arith.constant 0 : index
    %c0_1 = arith.constant 0 : index
    %0 = vector.load %arg1[%c0, %c0_0, %c0_1] : memref<16x8x32xf32, #tpu.memory_space<vmem>>, vector<16x8x32xf32>
    %1 = vector.shape_cast %0 : vector<16x8x32xf32> to vector<128x32xf32>
    %2 = arith.truncf %1 : vector<128x32xf32> to vector<128x32xbf16>
    %c0_2 = arith.constant 0 : index
    %c0_3 = arith.constant 0 : index
    %3 = vector.load %arg2[%c0_2, %c0_3] : memref<32x96xbf16, #tpu.memory_space<vmem>>, vector<32x96xbf16>
    %cst = arith.constant dense<0.000000e+00> : vector<128x96xf32>
    %4 = tpu.matmul %2, %3, %cst {dimension_numbers = #tpu.dot_dimension_numbers<[1], [0], [0], [1], [0, 0, 1, 1], [], []>} : vector<128x32xbf16>, vector<32x96xbf16>, vector<128x96xf32> -> vector<128x96xf32>
    %5 = vector.extract_strided_slice %4 {offsets = [0, 0], sizes = [128, 32], strides = [1, 1]} : vector<128x96xf32> to vector<128x32xf32>
    %6 = vector.shape_cast %5 : vector<128x32xf32> to vector<16x8x32xf32>
    %7 = arith.truncf %6 : vector<16x8x32xf32> to vector<16x8x32xbf16>
    %8 = vector.extract_strided_slice %4 {offsets = [0, 32], sizes = [128, 32], strides = [1, 1]} : vector<128x96xf32> to vector<128x32xf32>
    %9 = vector.shape_cast %8 : vector<128x32xf32> to vector<16x8x32xf32>
    %10 = vector.extract_strided_slice %4 {offsets = [0, 64], sizes = [128, 32], strides = [1, 1]} : vector<128x96xf32> to vector<128x32xf32>
    %11 = vector.shape_cast %10 : vector<128x32xf32> to vector<16x8x32xf32>
    %12 = tpu.iota {dimensions = array<i32: 0>} : vector<32x32xi32>
    %13 = tpu.iota {dimensions = array<i32: 1>} : vector<32x32xi32>
    %c3_i32 = arith.constant 3 : i32
    %14 = vector.broadcast %c3_i32 : i32 to vector<32x32xi32>
    %15 = arith.shrsi %12, %14 : vector<32x32xi32>
    %c3_i32_4 = arith.constant 3 : i32
    %16 = vector.broadcast %c3_i32_4 : i32 to vector<32x32xi32>
    %17 = arith.shrsi %13, %16 : vector<32x32xi32>
    %18 = arith.cmpi eq, %15, %17 : vector<32x32xi32>
    %19 = arith.extui %18 : vector<32x32xi1> to vector<32x32xi32>
    %20 = arith.sitofp %19 : vector<32x32xi32> to vector<32x32xf32>
    %21 = tpu.concatenate %9, %9, %9, %9 in 1 : vector<16x8x32xf32>, vector<16x8x32xf32>, vector<16x8x32xf32>, vector<16x8x32xf32> -> vector<16x32x32xf32>
    %22 = vector.shape_cast %20 : vector<32x32xf32> to vector<1x32x32xf32>
    %23 = vector.broadcast %22 : vector<1x32x32xf32> to vector<16x32x32xf32>
    %24 = arith.mulf %21, %23 : vector<16x32x32xf32>
    %25 = arith.truncf %24 : vector<16x32x32xf32> to vector<16x32x32xbf16>
    %26 = tpu.concatenate %11, %11, %11, %11 in 1 : vector<16x8x32xf32>, vector<16x8x32xf32>, vector<16x8x32xf32>, vector<16x8x32xf32> -> vector<16x32x32xf32>
    %27 = vector.shape_cast %20 : vector<32x32xf32> to vector<1x32x32xf32>
    %28 = vector.broadcast %27 : vector<1x32x32xf32> to vector<16x32x32xf32>
    %29 = arith.mulf %26, %28 : vector<16x32x32xf32>
    %30 = arith.truncf %29 : vector<16x32x32xf32> to vector<16x32x32xbf16>
    "tpu.trace_start"() <{level = 10 : i32, message = "btc,bjc->btj"}> : () -> ()
    %cst_5 = arith.constant dense<0.000000e+00> : vector<16x8x32xf32>
    %31 = tpu.matmul %7, %25, %cst_5 {dimension_numbers = #tpu.dot_dimension_numbers<[2], [2], [1], [1], [0, 0, 0, 1, 1, 1], [0], [0]>} : vector<16x8x32xbf16>, vector<16x32x32xbf16>, vector<16x8x32xf32> -> vector<16x8x32xf32>
    "tpu.trace_stop"() : () -> ()
    %32 = tpu.iota {dimensions = array<i32: 0>} : vector<8x32xi32>
    %33 = tpu.iota {dimensions = array<i32: 1>} : vector<8x32xi32>
    %c7_i32 = arith.constant 7 : i32
    %34 = vector.broadcast %c7_i32 : i32 to vector<8x32xi32>
    %35 = arith.andi %33, %34 : vector<8x32xi32>
    %36 = arith.cmpi sle, %35, %32 : vector<8x32xi32>
    %37 = vector.shape_cast %36 : vector<8x32xi1> to vector<1x8x32xi1>
    %cst_6 = arith.constant -1.000000e+30 : f32
    %38 = vector.shape_cast %37 : vector<1x8x32xi1> to vector<1x8x32xi1>
    %39 = vector.broadcast %38 : vector<1x8x32xi1> to vector<16x8x32xi1>
    %40 = vector.broadcast %cst_6 : f32 to vector<16x8x32xf32>
    %41 = arith.select %39, %31, %40 : vector<16x8x32xi1>, vector<16x8x32xf32>
    %cst_7 = arith.constant dense<0xFF800000> : vector<16x8xf32>
    %42 = vector.multi_reduction <maximumf>, %41, %cst_7 [2] : vector<16x8x32xf32> to vector<16x8xf32>
    %43 = vector.shape_cast %42 : vector<16x8xf32> to vector<16x8x1xf32>
    %44 = vector.broadcast %43 : vector<16x8x1xf32> to vector<16x8x32xf32>
    %45 = arith.subf %41, %44 : vector<16x8x32xf32>
    %46 = math.exp %45 : vector<16x8x32xf32>
    %47 = vector.shape_cast %46 : vector<16x8x32xf32> to vector<128x32xf32>
    %cst_8 = arith.constant dense<0.000000e+00> : vector<128x32xf32>
    %48 = tpu.matmul %47, %20, %cst_8 {dimension_numbers = #tpu.dot_dimension_numbers<[1], [0], [0], [1], [0, 0, 1, 1], [], []>} : vector<128x32xf32>, vector<32x32xf32>, vector<128x32xf32> -> vector<128x32xf32>
    %49 = arith.truncf %46 : vector<16x8x32xf32> to vector<16x8x32xbf16>
    "tpu.trace_start"() <{level = 10 : i32, message = "btj,bjc->btc"}> : () -> ()
    %cst_9 = arith.constant dense<0.000000e+00> : vector<16x8x32xf32>
    %50 = tpu.matmul %49, %30, %cst_9 {dimension_numbers = #tpu.dot_dimension_numbers<[2], [1], [1], [2], [0, 0, 0, 1, 1, 2], [0], [0]>} : vector<16x8x32xbf16>, vector<16x32x32xbf16>, vector<16x8x32xf32> -> vector<16x8x32xf32>
    "tpu.trace_stop"() : () -> ()
    %51 = vector.shape_cast %50 : vector<16x8x32xf32> to vector<128x32xf32>
    %52 = tpu.reciprocal %48 {approx = true} : vector<128x32xf32> -> vector<128x32xf32>
    %53 = arith.mulf %51, %52 : vector<128x32xf32>
    %54 = arith.truncf %53 : vector<128x32xf32> to vector<128x32xbf16>
    %c0_10 = arith.constant 0 : index
    %c0_11 = arith.constant 0 : index
    %55 = vector.load %arg3[%c0_10, %c0_11] : memref<32x32xbf16, #tpu.memory_space<vmem>>, vector<32x32xbf16>
    %cst_12 = arith.constant dense<0.000000e+00> : vector<128x32xf32>
    %56 = tpu.matmul %54, %55, %cst_12 {dimension_numbers = #tpu.dot_dimension_numbers<[1], [0], [0], [1], [0, 0, 1, 1], [], []>} : vector<128x32xbf16>, vector<32x32xbf16>, vector<128x32xf32> -> vector<128x32xf32>
    %c0_13 = arith.constant 0 : index
    %c0_14 = arith.constant 0 : index
    %57 = vector.load %arg4[%c0_13, %c0_14] : memref<1x32xf32, #tpu.memory_space<vmem>>, vector<1x32xf32>
    %58 = vector.broadcast %57 : vector<1x32xf32> to vector<128x32xf32>
    %59 = arith.addf %56, %58 : vector<128x32xf32>
    %60 = vector.shape_cast %59 : vector<128x32xf32> to vector<16x8x32xf32>
    %c0_15 = arith.constant 0 : index
    %c0_16 = arith.constant 0 : index
    %c0_17 = arith.constant 0 : index
    %61 = vector.load %arg5[%c0_15, %c0_16, %c0_17] : memref<16x8x32xf32, #tpu.memory_space<vmem>>, vector<16x8x32xf32>
    tpu.vector_store %arg5[%c0_15, %c0_16, %c0_17], %60 {strides = array<i32>} : memref<16x8x32xf32, #tpu.memory_space<vmem>>, vector<16x8x32xf32>,
    return
  }
  func.func @transform_0(%arg0: i32) -> (i32, i32, i32) {
    %c0_i32 = arith.constant 0 : i32
    %c0_i32_0 = arith.constant 0 : i32
    %c0_i32_1 = arith.constant 0 : i32
    return %arg0, %c0_i32, %c0_i32_0 : i32, i32, i32
  }
  func.func @transform_1(%arg0: i32) -> (i32, i32) {
    %c0_i32 = arith.constant 0 : i32
    %c0_i32_0 = arith.constant 0 : i32
    %c0_i32_1 = arith.constant 0 : i32
    return %c0_i32, %c0_i32_0 : i32, i32
  }
  func.func @transform_2(%arg0: i32) -> (i32, i32) {
    %c0_i32 = arith.constant 0 : i32
    %c0_i32_0 = arith.constant 0 : i32
    %c0_i32_1 = arith.constant 0 : i32
    return %c0_i32, %c0_i32_0 : i32, i32
  }
  func.func @transform_3(%arg0: i32) -> (i32, i32) {
    %c0_i32 = arith.constant 0 : i32
    %c0_i32_0 = arith.constant 0 : i32
    %c0_i32_1 = arith.constant 0 : i32
    return %c0_i32, %c0_i32_0 : i32, i32
  }
  func.func @transform_4(%arg0: i32) -> (i32, i32, i32) {
    %c0_i32 = arith.constant 0 : i32
    %c0_i32_0 = arith.constant 0 : i32
    %c0_i32_1 = arith.constant 0 : i32
    return %arg0, %c0_i32, %c0_i32_0 : i32, i32, i32
  }
}

</mosaic_0001>

<bundles_post_ra>
// kernel: tpu_custom_call.1
= control target key start
LH: loop header
LB: loop body
LE: loop exit
PB: predicated region body
PF: predicated region fallthrough
CT: control target
= control target key end

     0   :  { %9 = vsyncpa [#allocation3], 0  ;;  %s5352_s0 = inlined_call_operand.hbm [shape: f32[32,8,32], index: 0, kind: input, shape index: {}]   ;;  %s5353_s1 = inlined_call_operand.hbm [shape: bf16[32,96], index: 1, kind: input, shape index: {}]   ;;  %s5354_s2 = inlined_call_operand.hbm [shape: bf16[32,32], index: 2, kind: input, shape index: {}]   ;;  %s5355_s3 = inlined_call_operand.vmem [shape: f32[1,32], index: 3, kind: input, shape index: {}]   ;;  %s5356_s4 = inlined_call_operand.hbm [shape: f32[32,8,32], index: 4, kind: output, shape index: {}]  }
   0x1   :  { %11 = vsyncpa [#allocation3 + $0x1], 0 }
   0x2   :  { %12 = vsyncpa [#allocation6], 0 }
   0x3   :  { %13 = vsyncpa [#allocation4], 0 }
   0x4   :  { %15 = vsyncpa [#allocation4 + $0x1], 0  ;;  %s3916_s15 = smov 0   ;;  %s3918_s16 = smov 0  }
   0x5   :  { %s3920_s17 = smov 0   ;;  %s3922_s18 = smov 0  }
   0x6 LB: > { %s3937_s19 = sadd.s32 4294967295, %s3873_s18   ;;  %s2997_s20 = sadd.s32 4294967294, %s3873_s18   ;;  %s3873_s18 = sphi %s3922_s18, %s5469_s18   ;;  %s3869_s17 = sphi %s3920_s17, %s5468_s17   ;;  %s3865_s16 = sphi %s3918_s16, %s5467_s16   ;;  %s3861_s15 = sphi %s3916_s15, %s5466_s15  }
   0x7   : > { %p41_p0 = scmp.ne.s32.totalorder %s3865_s16, %s3861_s15  ;;  %p5357_p1 = scmp.eq.s32.totalorder %s3937_s19, 0 }
   0x8   : > { %p134_p3 = scmp.eq.s32.totalorder %s2997_s20, 1  ;;  %p2998_p5 = scmp.ge.s32.totalorder %s3873_s18, 1 }
   0x9   : > { %p3946_p4 = por %p5357_p1, %p41_p0  ;;  %p141_p7 = scmp.lt.s32.totalorder %s3873_s18, 3 }
   0xa   : > { %p3951_p6 = por %p134_p3, %p41_p0  ;;  %s3875_s24 = smov [#allocation5]  }
   0xb   : > { %s5379_s21 = scalar_select %p3946_p4, 1, 0 }
   0xc   : > { %s5380_s22 = scalar_select %p3951_p6, 1, 0 }
   0xd   : > { %p3956_p8 = pnand %p2998_p5, %p141_p7  ;;  %s153_s25 = sshll.u32 %s3875_s24, 4  ;;  %s154_s25 = int_to_ptr.vmem [resolvable:$true] %s153_s25 }
   0xe   : > { %s3876_s27 = smov [#allocation7]   ;;  %s3736_s29 = scalar_lea.vmem %s154_s25, 256 }
   0xf   : > { %s5381_s23 = scalar_select %p3956_p8, 1, 0 }
  0x10   : > { %p3570_p9 = pneg %p3956_p8  ;;  %s166_s28 = sshll.u32 %s3876_s27, 4  ;;  %s167_s28 = int_to_ptr.vmem [resolvable:$true] %s166_s28 }
  0x11   : > { %p3737_p13 = scmp.ne.s32.totalorder %s154_s25, %s3736_s29  ;;  %p3744_p5 = scmp.lt.s32.totalorder %s154_s25, %s154_s25 }
  0x12   : > { %p3965_p11 = pnand %p3570_p9, %p5357_p1  ;;  %p3745_p7 = scmp.lt.s32.totalorder %s3736_s29, %s3736_s29 }
  0x14   : > { %p3727_p12 = pneg %p3965_p11  ;;  %p3746_p10 = por %p3745_p7, %p3744_p5 }
  0x16   : > { %p3739_p0 = pnand %p3737_p13, %p3727_p12 }
  0x18   : > { %p3740_p3 = pneg %p3739_p0 }
  0x1a   : > { %p3747_p9 = pnand %p3746_p10, %p3740_p3 }
  0x1c   : > { %3750 = shalt.err (!%p3747_p9)
}
  0x1d   : > { %s3877_s30 = smov 64   ;;  %s3878_s5 = smov 4  }
  0x1e   : > { %3573 = dma.hbm_to_vmem [thread:$0]  (!%p3965_p11), %s5353_s1, 256, %s154_s25, [#allocation6], %s3877_s30, %s3877_s30, %s3878_s5  }
  0x1f   : > { %s3762_s8 = scalar_lea.vmem %s167_s28, 256  ;;  %p3770_p2 = scmp.lt.s32.totalorder %s167_s28, %s167_s28 }
  0x20   : > { %p3763_p1 = scmp.ne.s32.totalorder %s167_s28, %s3762_s8  ;;  %p3771_p6 = scmp.lt.s32.totalorder %s3762_s8, %s3762_s8 }
  0x22   : > { %p3765_p13 = pnand %p3763_p1, %p3727_p12  ;;  %p3772_p5 = por %p3771_p6, %p3770_p2 }
  0x24   : > { %p3766_p0 = pneg %p3765_p13 }
  0x26   : > { %p3773_p10 = pnand %p3772_p5, %p3766_p0 }
  0x28   : > { %3776 = shalt.err (!%p3773_p10)
}
  0x29   : > { %3576 = dma.hbm_to_vmem [thread:$0]  (!%p3965_p11), %s5354_s2, 256, %s167_s28, [#allocation6], %s3877_s30, %s3877_s30, %s3878_s5  }
  0x2a   : > { %s3988_s11 = sadd.s32 1, %s3873_s18   ;;  %s28_s12 = sadd.s32 1, %s3869_s17 }
  0x2b   : > { %s25_s13 = ssub.s32 %s3873_s18, %s3988_s11  ;;  %p35_p1 = scmp.ne.s32.totalorder %s3869_s17, %s3865_s16 }
  0x2c   : > { %p26_p2 = scmp.eq.s32.totalorder %s25_s13, 0  ;;  %p36_p6 = scmp.eq.s32.totalorder %s3873_s18, 0 }
  0x2d   : > { %p5383_p12 = scmp.eq.s32.totalorder %s3937_s19, 1  ;;  %p3587_p7 = scmp.lt.s32.totalorder %s3873_s18, 2 }
  0x2e   : > { %s4004_s20 = scalar_select %p26_p2, %s3869_s17, %s28_s12  }
  0x2f   : > { %p3998_p3 = por %p5383_p12, %p35_p1  ;;  %p37_p9 = por %p36_p6, %p35_p1 }
  0x30   : > { %s183_s24 = sand.u32 1, %s3869_s17   ;;  %s3092_s26 = sshll.u32 %s3873_s18, 11 }
  0x31   : > { %s5384_s14 = scalar_select %p3998_p3, 1, 0 }
  0x32   : > { %s3002_s25 = sshll.u32 %s183_s24, 7  ;;  %s4011_s29 = scalar_lea.hbm %s5352_s0, %s3092_s26 }
  0x33   : > { %s187_s30 = scalar_lea.vmem [#allocation2], %s3002_s25  ;;  %p4015_p11 = pnand %p3587_p7, %p37_p9 }
  0x34   : > { %s194_s5 = sshll.u32 %s187_s30, 4  ;;  %s4019_s7 = scalar_lea.sflag [#allocation3], %s183_s24  ;;  %s4013_s5 = int_to_ptr.vmem [resolvable:$true] %s194_s5 }
  0x35   : > { %s3777_s8 = scalar_lea.hbm %s4011_s29, 2048  ;;  %p3779_p0 = pneg %p4015_p11 }
  0x36   : > { %p3778_p13 = scmp.ne.s32.totalorder %s4011_s29, %s3777_s8  ;;  %s3782_s12 = scalar_lea.hbm %s5352_s0, 4096 }
  0x37   : > { %p3783_p1 = scmp.lt.s32.totalorder %s4011_s29, %s5352_s0  ;;  %p3784_p2 = scmp.lt.s32.totalorder %s3782_s12, %s3777_s8 }
  0x38   : > { %p3780_p5 = pnand %p3779_p0, %p3778_p13 }
  0x39   : > { %p3785_p6 = por %p3784_p2, %p3783_p1 }
  0x3a   : > { %p3781_p10 = pneg %p3780_p5 }
  0x3c   : > { %p3786_p12 = pnand %p3785_p6, %p3781_p10 }
  0x3e   : > { %3789 = shalt.err (!%p3786_p12)
}
  0x3f   : > { %s3790_s24 = scalar_lea.vmem %s4013_s5, 2048  ;;  %s3879_s26 = smov [#allocation2]  }
  0x40   : > { %p3791_p7 = scmp.ne.s32.totalorder %s4013_s5, %s3790_s24  ;;  %s3795_s27 = sshll.u32 %s3879_s26, 4  ;;  %s3796_s27 = int_to_ptr.vmem [resolvable:$false] %s3795_s27 }
  0x41   : > { %s3797_s28 = scalar_lea.vmem %s3796_s27, 4096  ;;  %p3798_p5 = scmp.lt.s32.totalorder %s4013_s5, %s3796_s27 }
  0x42   : > { %p3793_p9 = pnand %p3791_p7, %p3779_p0  ;;  %p3799_p3 = scmp.lt.s32.totalorder %s3797_s28, %s3790_s24 }
  0x44   : > { %p3794_p13 = pneg %p3793_p9  ;;  %p3800_p4 = por %p3799_p3, %p3798_p5 }
  0x46   : > { %p3801_p8 = pnand %p3800_p4, %p3794_p13 }
  0x48   : > { %3804 = shalt.err (!%p3801_p8)
}
  0x49   : > { %s3880_s30 = smov 128   ;;  %s3881_s8 = smov 8  }
  0x4a   : > { %3580 = dma.hbm_to_vmem [thread:$0]  (!%p4015_p11), %s4011_s29, 2048, %s4013_s5, %s4019_s7, %s3880_s30, %s3880_s30, %s3881_s8  }
  0x4b   : > { %p5386_p0 = scmp.ne.s32.totalorder %s5381_s23, 0 }
  0x4d   : > { %206 = sbr.rel (%p5386_p0) target bundleno = 1360 (0x550), region = 36 }
  0x52   : > { %s4043_s9 = sand.u32 1, %s3865_s16   ;;  %p5387_p4 = scmp.ne.s32.totalorder %s5379_s21, 0 }
  0x53   : > { %s3006_s10 = sshll.u32 %s4043_s9, 7  ;;  %s209_s12 = scalar_lea.sflag [#allocation3], %s4043_s9 }
  0x54   : > { %s4049_s13 = scalar_lea.vmem [#allocation2], %s3006_s10 }
  0x55   : > { %3848 = dma.done.wait (%p5387_p4), %s209_s12, 2048  }
  0x56   : > { %3850 = vsyncadd (%p5387_p4), %s209_s12, 4294965248  ;;  %p5388_p8 = scmp.eq.s32.totalorder %s3937_s19, 0 }
  0x58   : > { %3852 = dma.done.wait (%p5388_p8), [#allocation6], 512   ;;  %p5389_p3 = pmov %p5388_p8 }
  0x59   : > { %v426_v0 = vlaneseq  ;;  %v5361_v1 = vmov 0.0   ;;  %v3657_v13 = vld [vmem:[#allocation5 + $0x8] sm:$0xff]   ;;  %v3658_v16 = vld [vmem:[#allocation5] sm:$0xff]   ;;  %vm288_vm2 = vcmask 261120   ;;  %v250_v26 = vld [vmem:[%s4049_s13 + $0x10] sm:$0xff]  ;;  %s3883_s21 = smov 32  }
  0x5a   : > { %3854 = vsyncadd (%p5389_p3), [#allocation6], 4294966784  ;;  %3258 = vmatprep.subr.bf16.mxu1 %v5361_v1  ;;  %3230 = vmatprep.subr.bf16.mxu0 %v3657_v13  ;;  %v248_v19 = vld [vmem:[%s4049_s13] sm:$0xff]  ;;  %v249_v20 = vld [vmem:[%s4049_s13 + $0x8] sm:$0xff]  ;;  %s3884_s23 = smov 96   ;;  %vm3885_vm6 = vmmov 0  }
  0x5b   : > { %v427_v2 = vshrl.u32 %v426_v0, 7  ;;  %v432_v3 = vand.u32 127, %v426_v0  ;;  %3231 = vmatpush3.bf16.msra.mxu0 %v3657_v13  ;;  %v264_v25 = vpack.c.bf16 %v249_v20, %v248_v19  ;;  %v251_v27 = vld [vmem:[%s4049_s13 + $0x18] sm:$0xff]  ;;  %v252_v30 = vld [vmem:[%s4049_s13 + $0x20] sm:$0xff]  ;;  %v253_v31 = vld [vmem:[%s4049_s13 + $0x28] sm:$0xff]  ;;  %3262 = vmatprep.mubr.msk.bf16.mxu1 %vm3885_vm6, %v5361_v1  ;;  %s3886_s29 = smov 64  }
  0x5c   : > { %3232 = vmatprep.subr.bf16.mxu0 %v3658_v16  ;;  %v265_v33 = vpack.c.bf16 %v251_v27, %v250_v26  ;;  %v266_v34 = vpack.c.bf16 %v253_v31, %v252_v30  ;;  %v254_v35 = vld [vmem:[%s4049_s13 + $0x30] sm:$0xff]  ;;  %v255_v36 = vld [vmem:[%s4049_s13 + $0x38] sm:$0xff]  ;;  %v256_v37 = vld [vmem:[%s4049_s13 + $0x40] sm:$0xff]  ;;  %s5268_s7 = scalar_lea.vmem [#allocation8], %s3006_s10  ;;  %s3093_s25 = sshll.u32 %s3937_s19, 11 }
  0x5d   : > { %v429_v4 = vadd.s32 16, %v427_v2  ;;  %v430_v5 = vadd.s32 24, %v427_v2  ;;  %v437_v6 = vshra.s32 %v432_v3, 3  ;;  %v1550_v7 = vand.u32 7, %v432_v3  ;;  %3234 = vmatprep.mubr.msk.bf16.mxu0 %vm288_vm2, %v264_v25  ;;  %v257_v38 = vld [vmem:[%s4049_s13 + $0x48] sm:$0xff]  ;;  %v258_v41 = vld [vmem:[%s4049_s13 + $0x50] sm:$0xff]  ;;  %s5303_s28 = scalar_lea.hbm %s5356_s4, %s3093_s25 }
  0x5e   : > { %v428_v8 = vadd.s32 8, %v427_v2  ;;  %v433_v9 = vshra.s32 %v427_v2, 3  ;;  %v267_v39 = vpack.c.bf16 %v255_v36, %v254_v35  ;;  %v268_v40 = vpack.c.bf16 %v257_v38, %v256_v37  ;;  %v259_v42 = vld [vmem:[%s4049_s13 + $0x58] sm:$0xff]  ;;  %v260_v43 = vld [vmem:[%s4049_s13 + $0x60] sm:$0xff]  ;;  %v261_v44 = vld [vmem:[%s4049_s13 + $0x68] sm:$0xff]  ;;  %s2905_s24 = sshll.u32 %s5268_s7, 4  ;;  %s5305_s24 = int_to_ptr.vmem [resolvable:$true] %s2905_s24 }
  0x5f   : > { %v435_v10 = vshra.s32 %v429_v4, 3  ;;  %v436_v11 = vshra.s32 %v430_v5, 3  ;;  %vm4060_vm0 = vcmp.le.s32.totalorder %v1550_v7, %v427_v2  ;;  %3233 = vmatpush3.bf16.msra.mxu0 %v3658_v16  ;;  %v269_v45 = vpack.c.bf16 %v259_v42, %v258_v41  ;;  %v262_v47 = vld [vmem:[%s4049_s13 + $0x70] sm:$0xff]  ;;  %v263_v48 = vld [vmem:[%s4049_s13 + $0x78] sm:$0xff]  ;;  %s2892_s19 = scalar_lea.sflag [#allocation4], %s4043_s9  ;;  %s3805_s30 = scalar_lea.vmem %s5305_s24, 2048 }
  0x60   : > { %v434_v14 = vshra.s32 %v428_v8, 3  ;;  %vm4064_vm1 = vcmp.eq.s32.totalorder %v433_v9, %v437_v6  ;;  %3250 = vmatprep.subr.bf16.mxu0 %v5361_v1  ;;  %v270_v46 = vpack.c.bf16 %v261_v44, %v260_v43  ;;  %v271_v49 = vpack.c.bf16 %v263_v48, %v262_v47  ;;  %p3806_p11 = scmp.ne.s32.totalorder %s5305_s24, %s3805_s30  ;;  %p5463_p10 = scmp.ne.s32.totalorder %s5384_s14, 0 }
  0x61   : > { %vm4068_vm3 = vcmp.eq.s32.totalorder %v435_v10, %v437_v6  ;;  %vm4072_vm4 = vcmp.eq.s32.totalorder %v436_v11, %v437_v6  ;;  %v3020_v24 = vsel %vm4064_vm1, 1.0, %v5361_v1  ;;  %s3888_s8 = smov [#allocation8]  }
  0x62   : > { %v3022_v21 = vsel %vm4068_vm3, 1.0, %v5361_v1  ;;  %v3023_v22 = vsel %vm4072_vm4, 1.0, %v5361_v1  ;;  %vm4084_vm5 = vcmp.eq.s32.totalorder %v434_v14, %v437_v6  ;;  %3235 = vmatmul.mubr.msk.bf16.vlgmr.msra.gmra.mxu0 %vm288_vm2, %v265_v33  ;;  %p3807_p1 = pnand %p3806_p11, %p5463_p10  ;;  %s3809_s10 = sshll.u32 %s3888_s8, 4  ;;  %s3810_s10 = int_to_ptr.vmem [resolvable:$false] %s3809_s10 }
  0x63   : > { %v4093_v28 = vpack.i.bf16 %v3023_v22, %v3022_v21  ;;  %v3021_v29 = vsel %vm4084_vm5, 1.0, %v5361_v1  ;;  %3238 = vmatprep.mubr.msk.bf16.mxu0 %vm288_vm2, %v266_v34  ;;  %s3811_s12 = scalar_lea.vmem %s3810_s10, 4096  ;;  %p3812_p6 = scmp.lt.s32.totalorder %s5305_s24, %s3810_s10 }
  0x64   : > { %v4102_v32 = vpack.i.bf16 %v3021_v29, %v3020_v24  ;;  %p3808_p2 = pneg %p3807_p1  ;;  %p3813_p12 = scmp.lt.s32.totalorder %s3811_s12, %s3805_s30 }
  0x65   : > { %3638 = vrot.lane.b32.xlu0 %v4093_v28, %s3883_s21 }
  0x66   : > { %p3814_p7 = por %p3813_p12, %p3812_p6 }
  0x68   : > { %p3815_p9 = pnand %p3814_p7, %p3808_p2 }
  0x69   : > { %3643 = vrot.lane.b32.xlu0 %v4102_v32, %s3883_s21 }
  0x6a   : > { %3239 = vmatmul.mubr.msk.bf16.gmra.mxu0 %vm288_vm2, %v267_v39 }
  0x6b   : > { %3242 = vmatprep.mubr.msk.bf16.mxu0 %vm288_vm2, %v268_v40 }
  0x72   : > { %3243 = vmatmul.mubr.msk.bf16.gmra.mxu0 %vm288_vm2, %v269_v45 }
  0x73   : > { %3246 = vmatprep.mubr.msk.bf16.mxu0 %vm288_vm2, %v270_v46 }
  0x7a   : > { %3247 = vmatmul.mubr.msk.bf16.gmra.mxu0 %vm288_vm2, %v271_v49 }
  0x7b   : > { %3254 = vmatprep.mubr.msk.bf16.mxu0 %vm3885_vm6, %v5361_v1 }
  0xd7   : > { %v3639_v50 = vpop.permute.xlu0 %3638 }
  0xd8   : > { %v4125_v53 = vunpack.i.h.bf16 %v3639_v50  ;;  %v4127_v54 = vunpack.i.l.bf16 %v3639_v50 }
  0xdb   : > { %v3644_v51 = vpop.permute.xlu0 %3643 }
  0xdc   : > { %v4129_v55 = vunpack.i.h.bf16 %v3644_v51  ;;  %v4131_v56 = vunpack.i.l.bf16 %v3644_v51 }
 0x122   : > { %v4123_v52 = vpop.f32.mrf.mxu0 }
 0x123   : > { %v476_v2 = vmul.f32 %v4127_v54, %v4123_v52  ;;  %v477_v3 = vmul.f32 %v4125_v53, %v4123_v52  ;;  %v474_v8 = vmul.f32 %v4131_v56, %v4123_v52  ;;  %v475_v9 = vmul.f32 %v4129_v55, %v4123_v52 }
 0x124   : > { %v4133_v57 = vpop.f32.mrf.mxu0 }
 0x125   : > { %v468_v58 = vmul.f32 %v4127_v54, %v4133_v57  ;;  %v469_v59 = vmul.f32 %v4125_v53, %v4133_v57  ;;  %v466_v60 = vmul.f32 %v4131_v56, %v4133_v57  ;;  %v467_v61 = vmul.f32 %v4129_v55, %v4133_v57 }
 0x126   : > { %v4143_v62 = vpop.f32.mrf.mxu0  ;;  %v535_v10 = vpack.c.bf16 %v477_v3, %v476_v2  ;;  %v534_v20 = vpack.c.bf16 %v475_v9, %v474_v8 }
 0x127   : > { %v531_v63 = vpack.c.bf16 %v469_v59, %v468_v58  ;;  %v530_v0 = vpack.c.bf16 %v467_v61, %v466_v60  ;;  %v480_v21 = vmul.f32 %v4127_v54, %v4143_v62  ;;  %v481_v24 = vmul.f32 %v4125_v53, %v4143_v62 }
 0x128   : > { %v4149_v4 = vpop.f32.mrf.mxu0  ;;  %v478_v30 = vmul.f32 %v4131_v56, %v4143_v62  ;;  %v479_v31 = vmul.f32 %v4129_v55, %v4143_v62 }
 0x129   : > { %674 = vrot.lane.b32.xlu1 %v531_v63, %s3884_s23  ;;  %672 = vrot.lane.b32.xlu0 %v530_v0, %s3884_s23  ;;  %v472_v5 = vmul.f32 %v4127_v54, %v4149_v4  ;;  %v473_v6 = vmul.f32 %v4125_v53, %v4149_v4  ;;  %v470_v13 = vmul.f32 %v4131_v56, %v4149_v4 }
 0x12a   : > { %v4157_v7 = vpop.f32.mrf.mxu0  ;;  %v471_v14 = vmul.f32 %v4129_v55, %v4149_v4  ;;  %v537_v33 = vpack.c.bf16 %v481_v24, %v480_v21  ;;  %v536_v39 = vpack.c.bf16 %v479_v31, %v478_v30 }
 0x12b   : > { %v533_v11 = vpack.c.bf16 %v473_v6, %v472_v5  ;;  %v492_v40 = vmul.f32 %v4127_v54, %v4157_v7  ;;  %v493_v42 = vmul.f32 %v4125_v53, %v4157_v7  ;;  %v490_v47 = vmul.f32 %v4131_v56, %v4157_v7 }
 0x12c   : > { %v4171_v16 = vpop.f32.mrf.mxu0  ;;  %v532_v22 = vpack.c.bf16 %v471_v14, %v470_v13  ;;  %v491_v48 = vmul.f32 %v4129_v55, %v4157_v7 }
 0x12d   : > { %784 = vrot.lane.b32.xlu0 %v535_v10, %s3884_s23  ;;  %729 = vrot.lane.b32.xlu1 %v533_v11, %s3884_s23  ;;  %v484_v25 = vmul.f32 %v4127_v54, %v4171_v16  ;;  %v485_v26 = vmul.f32 %v4125_v53, %v4171_v16  ;;  %v482_v35 = vmul.f32 %v4131_v56, %v4171_v16 }
 0x12e   : > { %v4175_v19 = vpop.f32.mrf.mxu0  ;;  %v483_v36 = vmul.f32 %v4129_v55, %v4171_v16  ;;  %v543_v49 = vpack.c.bf16 %v493_v42, %v492_v40  ;;  %v542_v61 = vpack.c.bf16 %v491_v48, %v490_v47 }
 0x12f   : > { %v539_v34 = vpack.c.bf16 %v485_v26, %v484_v25  ;;  %v496_v63 = vmul.f32 %v4127_v54, %v4175_v19  ;;  %v497_v0 = vmul.f32 %v4125_v53, %v4175_v19  ;;  %v494_v9 = vmul.f32 %v4131_v56, %v4175_v19 }
 0x130   : > { %v4185_v27 = vpop.f32.mrf.mxu0  ;;  %v538_v41 = vpack.c.bf16 %v483_v36, %v482_v35  ;;  %v495_v10 = vmul.f32 %v4129_v55, %v4175_v19 }
 0x131   : > { %782 = vrot.lane.b32.xlu0 %v534_v20, %s3884_s23  ;;  %727 = vrot.lane.b32.xlu1 %v532_v22, %s3884_s23  ;;  %v488_v43 = vmul.f32 %v4127_v54, %v4185_v27  ;;  %v489_v44 = vmul.f32 %v4125_v53, %v4185_v27  ;;  %v486_v51 = vmul.f32 %v4131_v56, %v4185_v27 }
 0x132   : > { %v4189_v29 = vpop.f32.mrf.mxu0  ;;  %v487_v58 = vmul.f32 %v4129_v55, %v4185_v27  ;;  %v545_v13 = vpack.c.bf16 %v497_v0, %v496_v63  ;;  %v544_v22 = vpack.c.bf16 %v495_v10, %v494_v9 }
 0x133   : > { %v541_v50 = vpack.c.bf16 %v489_v44, %v488_v43  ;;  %v508_v24 = vmul.f32 %v4127_v54, %v4189_v29  ;;  %v509_v26 = vmul.f32 %v4125_v53, %v4189_v29 }
 0x134   : > { %v4199_v37 = vpop.f32.mrf.mxu0  ;;  %v540_v2 = vpack.c.bf16 %v487_v58, %v486_v51 }
 0x135   : > { %839 = vrot.lane.b32.xlu1 %v537_v33, %s3884_s23  ;;  %894 = vrot.lane.b32.xlu0 %v539_v34, %s3884_s23  ;;  %v500_v3 = vmul.f32 %v4127_v54, %v4199_v37  ;;  %v501_v5 = vmul.f32 %v4125_v53, %v4199_v37  ;;  %v498_v20 = vmul.f32 %v4131_v56, %v4199_v37 }
 0x136   : > { %v4203_v38 = vpop.f32.mrf.mxu0  ;;  %v499_v21 = vmul.f32 %v4129_v55, %v4199_v37  ;;  %v506_v33 = vmul.f32 %v4131_v56, %v4189_v29  ;;  %v507_v34 = vmul.f32 %v4129_v55, %v4189_v29  ;;  %v551_v35 = vpack.c.bf16 %v509_v26, %v508_v24 }
 0x137   : > { %v547_v14 = vpack.c.bf16 %v501_v5, %v500_v3  ;;  %v512_v42 = vmul.f32 %v4127_v54, %v4203_v38  ;;  %v513_v44 = vmul.f32 %v4125_v53, %v4203_v38 }
 0x138   : > { %v4213_v45 = vpop.f32.mrf.mxu0  ;;  %v546_v25 = vpack.c.bf16 %v499_v21, %v498_v20 }
 0x139   : > { %837 = vrot.lane.b32.xlu1 %v536_v39, %s3884_s23  ;;  %892 = vrot.lane.b32.xlu0 %v538_v41, %s3884_s23  ;;  %v504_v30 = vmul.f32 %v4127_v54, %v4213_v45  ;;  %v505_v31 = vmul.f32 %v4125_v53, %v4213_v45  ;;  %v502_v39 = vmul.f32 %v4131_v56, %v4213_v45 }
 0x13a   : > { %v4217_v46 = vpop.f32.mrf.mxu0  ;;  %v503_v40 = vmul.f32 %v4129_v55, %v4213_v45  ;;  %v550_v41 = vpack.c.bf16 %v507_v34, %v506_v33  ;;  %v553_v51 = vpack.c.bf16 %v513_v44, %v512_v42  ;;  %v411_v44 = vpack.c.bf16 %v4149_v4, %v4149_v4 }
 0x13b   : > { %v549_v36 = vpack.c.bf16 %v505_v31, %v504_v30  ;;  %v524_v3 = vmul.f32 %v4127_v54, %v4217_v46  ;;  %v525_v9 = vmul.f32 %v4125_v53, %v4217_v46  ;;  %v523_v20 = vmul.f32 %v4129_v55, %v4217_v46 }
 0x13c   : > { %v4227_v59 = vpop.f32.mrf.mxu0  ;;  %v548_v43 = vpack.c.bf16 %v503_v40, %v502_v39  ;;  %v410_v40 = vpack.c.bf16 %v4133_v57, %v4133_v57 }
 0x13d   : > { %1004 = vrot.lane.b32.xlu0 %v543_v49, %s3884_s23  ;;  %949 = vrot.lane.b32.xlu1 %v541_v50, %s3884_s23  ;;  %v516_v47 = vmul.f32 %v4127_v54, %v4227_v59  ;;  %v517_v48 = vmul.f32 %v4125_v53, %v4227_v59  ;;  %v510_v49 = vmul.f32 %v4131_v56, %v4203_v38 }
 0x13e   : > { %v4231_v60 = vpop.f32.mrf.mxu0  ;;  %v511_v50 = vmul.f32 %v4129_v55, %v4203_v38  ;;  %v515_v63 = vmul.f32 %v4129_v55, %v4227_v59  ;;  %v559_v21 = vpack.c.bf16 %v525_v9, %v524_v3  ;;  %v412_v3 = vpack.c.bf16 %v4123_v52, %v4123_v52 }
 0x13f   : > { %v4243_v6 = vmul.f32 %v4131_v56, %v4231_v60  ;;  %v4247_v8 = vmul.f32 %v4129_v55, %v4231_v60  ;;  %v555_v58 = vpack.c.bf16 %v517_v48, %v516_v47  ;;  %v528_v31 = vmul.f32 %v4127_v54, %v4231_v60 }
 0x140   : > { %v4301_v0 = vpop.f32.mrf.mxu0  ;;  %v529_v33 = vmul.f32 %v4125_v53, %v4231_v60 }
 0x141   : > { %1002 = vrot.lane.b32.xlu0 %v542_v61, %s3884_s23  ;;  %947 = vrot.lane.b32.xlu1 %v540_v2, %s3884_s23  ;;  %v560_v11 = vpack.c.bf16 %v4247_v8, %v4243_v6  ;;  %v514_v61 = vmul.f32 %v4131_v56, %v4227_v59  ;;  %v552_v2 = vpack.c.bf16 %v511_v50, %v510_v49 }
 0x142   : > { %v520_v10 = vmul.f32 %v4127_v54, %v4301_v0  ;;  %v518_v24 = vmul.f32 %v4131_v56, %v4301_v0 }
 0x143   : > { %v554_v5 = vpack.c.bf16 %v515_v63, %v514_v61 }
 0x145   : > { %1059 = vrot.lane.b32.xlu1 %v545_v13, %s3884_s23  ;;  %1114 = vrot.lane.b32.xlu0 %v547_v14, %s3884_s23  ;;  %v521_v13 = vmul.f32 %v4125_v53, %v4301_v0  ;;  %v522_v14 = vmul.f32 %v4131_v56, %v4217_v46  ;;  %v561_v56 = vpack.c.bf16 %v529_v33, %v528_v31 }
 0x146   : > { %v414_v33 = vpack.c.bf16 %v4171_v16, %v4171_v16 }
 0x147   : > { %v558_v26 = vpack.c.bf16 %v523_v20, %v522_v14 }
 0x149   : > { %1057 = vrot.lane.b32.xlu1 %v544_v22, %s3884_s23  ;;  %1112 = vrot.lane.b32.xlu0 %v546_v25, %s3884_s23  ;;  %v557_v22 = vpack.c.bf16 %v521_v13, %v520_v10  ;;  %v519_v25 = vmul.f32 %v4129_v55, %v4301_v0  ;;  %v413_v13 = vpack.c.bf16 %v4143_v62, %v4143_v62 }
 0x14b   : > { %v556_v30 = vpack.c.bf16 %v519_v25, %v518_v24 }
 0x14d   : > { %1224 = vrot.lane.b32.xlu0 %v551_v35, %s3884_s23  ;;  %1169 = vrot.lane.b32.xlu1 %v549_v36, %s3884_s23 }
 0x151   : > { %1222 = vrot.lane.b32.xlu0 %v550_v41, %s3884_s23  ;;  %1167 = vrot.lane.b32.xlu1 %v548_v43, %s3884_s23 }
 0x155   : > { %1279 = vrot.lane.b32.xlu1 %v553_v51, %s3884_s23  ;;  %1334 = vrot.lane.b32.xlu0 %v555_v58, %s3884_s23 }
 0x159   : > { %1277 = vrot.lane.b32.xlu1 %v552_v2, %s3884_s23  ;;  %1332 = vrot.lane.b32.xlu0 %v554_v5, %s3884_s23 }
 0x15d   : > { %1444 = vrot.lane.b32.xlu0 %v559_v21, %s3884_s23  ;;  %1389 = vrot.lane.b32.xlu1 %v557_v22, %s3884_s23 }
 0x161   : > { %1442 = vrot.lane.b32.xlu0 %v558_v26, %s3884_s23  ;;  %1387 = vrot.lane.b32.xlu1 %v556_v30, %s3884_s23 }
 0x165   : > { %3648 = vrot.lane.b32.xlu0 %v4093_v28, %s3886_s29  ;;  %1499 = vrot.lane.b32.xlu1 %v561_v56, %s3884_s23 }
 0x169   : > { %1497 = vrot.lane.b32.xlu1 %v560_v11, %s3884_s23 }
 0x16d   : > { %3653 = vrot.lane.b32.xlu1 %v4102_v32, %s3886_s29 }
 0x19b   : > { %v675_v53 = vpop.permute.xlu1 %674  ;;  %v673_v54 = vpop.permute.xlu0 %672 }
 0x19c   : > { %v683_v55 = vsel %vm288_vm2, %v675_v53, 0  ;;  %v680_v8 = vsel %vm288_vm2, %v673_v54, 0 }
 0x19d   : > { %3251 = vmatpush3.bf16.xpose.msra.mxu0 %v683_v55  ;;  %v415_v55 = vpack.c.bf16 %v4185_v27, %v4185_v27 }
 0x19e   : > { %3252 = vmatprep.subr.bf16.mxu0 %v5361_v1 }
 0x19f   : > { %v785_v34 = vpop.permute.xlu0 %784  ;;  %v730_v35 = vpop.permute.xlu1 %729 }
 0x1a0   : > { %v738_v28 = vsel %vm288_vm2, %v730_v35, 0  ;;  %v793_v43 = vsel %vm288_vm2, %v785_v34, 0 }
 0x1a1   : > { %3259 = vmatpush3.bf16.xpose.msra.mxu1 %v738_v28 }
 0x1a2   : > { %3260 = vmatprep.subr.bf16.mxu1 %v5361_v1 }
 0x1a3   : > { %v783_v36 = vpop.permute.xlu0 %782  ;;  %v728_v6 = vpop.permute.xlu1 %727 }
 0x1a4   : > { %v735_v39 = vsel %vm288_vm2, %v728_v6, 0  ;;  %v790_v58 = vsel %vm288_vm2, %v783_v36, 0 }
 0x1a5   : > { %3253 = vmatpush3.bf16.xpose.msra.mxu0 %v680_v8 }
 0x1a6   : > { %3266 = vmatprep.subr.bf16.mxu0 %v5361_v1 }
 0x1a7   : > { %v840_v32 = vpop.permute.xlu1 %839  ;;  %v895_v11 = vpop.permute.xlu0 %894 }
 0x1a8   : > { %v848_v49 = vsel %vm288_vm2, %v840_v32, 0  ;;  %v903_v10 = vsel %vm288_vm2, %v895_v11, 0 }
 0x1a9   : > { %3261 = vmatpush3.bf16.xpose.msra.mxu1 %v735_v39 }
 0x1aa   : > { %3274 = vmatprep.subr.bf16.mxu1 %v5361_v1 }
 0x1ab   : > { %v838_v41 = vpop.permute.xlu1 %837  ;;  %v893_v42 = vpop.permute.xlu0 %892 }
 0x1ac   : > { %3255 = vmatmul.mubr.msk.bf16.vlgmr.msra.gmra.mxu0 %vm288_vm2, %v410_v40  ;;  %v845_v2 = vsel %vm288_vm2, %v838_v41, 0  ;;  %v900_v25 = vsel %vm288_vm2, %v893_v42, 0  ;;  %v416_v42 = vpack.c.bf16 %v4157_v7, %v4157_v7 }
 0x1ad   : > { %3267 = vmatpush3.bf16.xpose.msra.mxu0 %v793_v43  ;;  %3270 = vmatprep.mubr.msk.bf16.mxu0 %vm3885_vm6, %v5361_v1  ;;  %v417_v43 = vpack.c.bf16 %v4175_v19, %v4175_v19 }
 0x1ae   : > { %3268 = vmatprep.subr.bf16.mxu0 %v5361_v1 }
 0x1af   : > { %v1005_v47 = vpop.permute.xlu0 %1004  ;;  %v950_v48 = vpop.permute.xlu1 %949 }
 0x1b0   : > { %3263 = vmatmul.mubr.msk.bf16.vlgmr.msra.gmra.mxu1 %vm288_vm2, %v411_v44  ;;  %v958_v21 = vsel %vm288_vm2, %v950_v48, 0  ;;  %v1013_v54 = vsel %vm288_vm2, %v1005_v47, 0 }
 0x1b1   : > { %3275 = vmatpush3.bf16.xpose.msra.mxu1 %v848_v49  ;;  %3278 = vmatprep.mubr.msk.bf16.mxu1 %vm3885_vm6, %v5361_v1 }
 0x1b2   : > { %3276 = vmatprep.subr.bf16.mxu1 %v5361_v1 }
 0x1b3   : > { %v1003_v50 = vpop.permute.xlu0 %1002  ;;  %v948_v51 = vpop.permute.xlu1 %947 }
 0x1b4   : > { %v955_v31 = vsel %vm288_vm2, %v948_v51, 0  ;;  %v1010_v8 = vsel %vm288_vm2, %v1003_v50, 0 }
 0x1b5   : > { %3269 = vmatpush3.bf16.xpose.msra.mxu0 %v790_v58 }
 0x1b6   : > { %3282 = vmatprep.subr.bf16.mxu0 %v5361_v1 }
 0x1b7   : > { %v1060_v61 = vpop.permute.xlu1 %1059  ;;  %v4364_v63 = vpop.permute.xlu0 %1114 }
 0x1b8   : > { %v1068_v28 = vsel %vm288_vm2, %v1060_v61, 0 }
 0x1b9   : > { %3277 = vmatpush3.bf16.xpose.msra.mxu1 %v845_v2 }
 0x1ba   : > { %3290 = vmatprep.subr.bf16.mxu1 %v5361_v1 }
 0x1bb   : > { %v1058_v5 = vpop.permute.xlu1 %1057  ;;  %v4370_v9 = vpop.permute.xlu0 %1112 }
 0x1bc   : > { %3271 = vmatmul.mubr.msk.bf16.vlgmr.msra.gmra.mxu0 %vm288_vm2, %v412_v3  ;;  %v1065_v39 = vsel %vm288_vm2, %v1058_v5, 0 }
 0x1bd   : > { %3283 = vmatpush3.bf16.xpose.msra.mxu0 %v903_v10  ;;  %3286 = vmatprep.mubr.msk.bf16.mxu0 %vm3885_vm6, %v5361_v1  ;;  %v1123_v10 = vsel %vm288_vm2, %v4364_v63, 0 }
 0x1be   : > { %3284 = vmatprep.subr.bf16.mxu0 %v5361_v1 }
 0x1bf   : > { %v4379_v14 = vpop.permute.xlu0 %1224  ;;  %v4381_v20 = vpop.permute.xlu1 %1169 }
 0x1c0   : > { %3279 = vmatmul.mubr.msk.bf16.vlgmr.msra.gmra.mxu1 %vm288_vm2, %v413_v13 }
 0x1c1   : > { %3291 = vmatpush3.bf16.xpose.msra.mxu1 %v958_v21  ;;  %3294 = vmatprep.mubr.msk.bf16.mxu1 %vm3885_vm6, %v5361_v1 }
 0x1c2   : > { %3292 = vmatprep.subr.bf16.mxu1 %v5361_v1 }
 0x1c3   : > { %v4388_v22 = vpop.permute.xlu0 %1222  ;;  %v4390_v24 = vpop.permute.xlu1 %1167 }
 0x1c5   : > { %3285 = vmatpush3.bf16.xpose.msra.mxu0 %v900_v25 }
 0x1c6   : > { %3298 = vmatprep.subr.bf16.mxu0 %v5361_v1 }
 0x1c7   : > { %v4394_v26 = vpop.permute.xlu1 %1279  ;;  %v4396_v30 = vpop.permute.xlu0 %1334 }
 0x1c9   : > { %3293 = vmatpush3.bf16.xpose.msra.mxu1 %v955_v31 }
 0x1ca   : > { %3306 = vmatprep.subr.bf16.mxu1 %v5361_v1 }
 0x1cb   : > { %v4402_v56 = vpop.permute.xlu1 %1277  ;;  %v4404_v53 = vpop.permute.xlu0 %1332 }
 0x1cc   : > { %3287 = vmatmul.mubr.msk.bf16.vlgmr.msra.gmra.mxu0 %vm288_vm2, %v414_v33 }
 0x1cd   : > { %3299 = vmatpush3.bf16.xpose.msra.mxu0 %v1013_v54  ;;  %3302 = vmatprep.mubr.msk.bf16.mxu0 %vm3885_vm6, %v5361_v1  ;;  %v1178_v54 = vsel %vm288_vm2, %v4381_v20, 0 }
 0x1ce   : > { %3300 = vmatprep.subr.bf16.mxu0 %v5361_v1 }
 0x1cf   : > { %v4413_v34 = vpop.permute.xlu0 %1444  ;;  %v4415_v35 = vpop.permute.xlu1 %1389 }
 0x1d0   : > { %3295 = vmatmul.mubr.msk.bf16.vlgmr.msra.gmra.mxu1 %vm288_vm2, %v415_v55 }
 0x1d1   : > { %3307 = vmatpush3.bf16.xpose.msra.mxu1 %v1068_v28  ;;  %3310 = vmatprep.mubr.msk.bf16.mxu1 %vm3885_vm6, %v5361_v1 }
 0x1d2   : > { %3308 = vmatprep.subr.bf16.mxu1 %v5361_v1 }
 0x1d3   : > { %v4422_v36 = vpop.permute.xlu0 %1442  ;;  %v4424_v6 = vpop.permute.xlu1 %1387 }
 0x1d5   : > { %3301 = vmatpush3.bf16.xpose.msra.mxu0 %v1010_v8 }
 0x1d6   : > { %3314 = vmatprep.subr.bf16.mxu0 %v5361_v1 }
 0x1d7   : > { %v3649_v32 = vpop.permute.xlu0 %3648  ;;  %v4428_v11 = vpop.permute.xlu1 %1499 }
 0x1d8   : > { %v4431_v40 = vunpack.i.h.bf16 %v3649_v32  ;;  %v4433_v41 = vunpack.i.l.bf16 %v3649_v32 }
 0x1d9   : > { %3309 = vmatpush3.bf16.xpose.msra.mxu1 %v1065_v39 }
 0x1da   : > { %v576_v48 = vmul.f32 %v4433_v41, %v4133_v57  ;;  %v577_v49 = vmul.f32 %v4431_v40, %v4133_v57  ;;  %3322 = vmatprep.subr.bf16.mxu1 %v5361_v1  ;;  %v580_v50 = vmul.f32 %v4433_v41, %v4149_v4  ;;  %v581_v51 = vmul.f32 %v4431_v40, %v4149_v4 }
 0x1db   : > { %v4452_v58 = vpop.permute.xlu1 %1497  ;;  %v4456_v61 = vmul.f32 %v4433_v41, %v4143_v62  ;;  %v4460_v2 = vmul.f32 %v4431_v40, %v4143_v62  ;;  %v4464_v3 = vmul.f32 %v4433_v41, %v4123_v52  ;;  %v4468_v5 = vmul.f32 %v4431_v40, %v4123_v52 }
 0x1dc   : > { %3303 = vmatmul.mubr.msk.bf16.vlgmr.msra.gmra.mxu0 %vm288_vm2, %v416_v42  ;;  %v639_v13 = vpack.c.bf16 %v577_v49, %v576_v48  ;;  %v641_v21 = vpack.c.bf16 %v581_v51, %v580_v50  ;;  %v4475_v25 = vmul.f32 %v4433_v41, %v4185_v27  ;;  %v4485_v63 = vmul.f32 %v4431_v40, %v4185_v27 }
 0x1dd   : > { %3315 = vmatpush3.bf16.xpose.msra.mxu0 %v1123_v10  ;;  %3318 = vmatprep.mubr.msk.bf16.mxu0 %vm3885_vm6, %v5361_v1  ;;  %v4493_v55 = vmul.f32 %v4433_v41, %v4175_v19  ;;  %v4497_v28 = vmul.f32 %v4431_v40, %v4175_v19  ;;  %v4501_v8 = vmul.f32 %v4433_v41, %v4171_v16 }
 0x1de   : > { %1879 = vrot.lane.b32.xlu1 %v639_v13, %s3886_s29  ;;  %3316 = vmatprep.subr.bf16.mxu0 %v5361_v1  ;;  %v4507_v39 = vmul.f32 %v4431_v40, %v4171_v16  ;;  %v4511_v42 = vmul.f32 %v4433_v41, %v4213_v45  ;;  %v4515_v48 = vmul.f32 %v4431_v40, %v4213_v45  ;;  %v1120_v13 = vsel %vm288_vm2, %v4370_v9, 0 }
 0x1df   : > { %v3654_v32 = vpop.permute.xlu1 %3653  ;;  %v4526_v10 = vmul.f32 %v4433_v41, %v4157_v7  ;;  %v4538_v51 = vmul.f32 %v4431_v40, %v4157_v7  ;;  %v5422_v12 = vpack.c.bf16 %v4485_v63, %v4475_v25  ;;  %v5425_v25 = vpack.c.bf16 %v4497_v28, %v4493_v55 }
 0x1e0   : > { %v4517_v49 = vunpack.i.h.bf16 %v3654_v32  ;;  %v4519_v50 = vunpack.i.l.bf16 %v3654_v32  ;;  %3311 = vmatmul.mubr.msk.bf16.vlgmr.msra.gmra.mxu1 %vm288_vm2, %v417_v43  ;;  %v5429_v55 = vpack.c.bf16 %v4515_v48, %v4511_v42 }
 0x1e1   : > { %5400 = vst [vmem:[#allocation12_spill] sm:$0xff] %v4526_v10  ;;  %3323 = vmatpush3.bf16.xpose.msra.mxu1 %v1178_v54  ;;  %3326 = vmatprep.mubr.msk.bf16.mxu1 %vm3885_vm6, %v5361_v1  ;;  %v1233_v10 = vsel %vm288_vm2, %v4379_v14, 0 }
 0x1e2   : > { %1930 = vrot.lane.b32.xlu1 %v641_v21, %s3886_s29  ;;  %v578_v20 = vmul.f32 %v4519_v50, %v4149_v4  ;;  %v579_v9 = vmul.f32 %v4517_v49, %v4149_v4  ;;  %v574_v54 = vmul.f32 %v4519_v50, %v4133_v57  ;;  %v575_v32 = vmul.f32 %v4517_v49, %v4133_v57 }
 0x1e3   : > { %3324 = vmatprep.subr.bf16.mxu1 %v5361_v1  ;;  %v4552_v43 = vmul.f32 %v4519_v50, %v4143_v62  ;;  %v4556_v21 = vmul.f32 %v4517_v49, %v4143_v62  ;;  %v4560_v47 = vmul.f32 %v4519_v50, %v4185_v27  ;;  %v4564_v4 = vmul.f32 %v4517_v49, %v4185_v27 }
 0x1e4   : > { %v640_v44 = vpack.c.bf16 %v579_v9, %v578_v20  ;;  %v638_v57 = vpack.c.bf16 %v575_v32, %v574_v54  ;;  %v4568_v33 = vmul.f32 %v4519_v50, %v4123_v52  ;;  %v4572_v31 = vmul.f32 %v4517_v49, %v4123_v52 }
 0x1e5   : > { %3317 = vmatpush3.bf16.xpose.msra.mxu0 %v1120_v13  ;;  %v4580_v27 = vmul.f32 %v4519_v50, %v4175_v19  ;;  %v4584_v20 = vmul.f32 %v4517_v49, %v4175_v19  ;;  %v1175_v32 = vsel %vm288_vm2, %v4390_v24, 0  ;;  %v4594_v13 = vmul.f32 %v4519_v50, %v4171_v16 }
 0x1e6   : > { %1928 = vrot.lane.b32.xlu1 %v640_v44, %s3886_s29  ;;  %1877 = vrot.lane.b32.xlu0 %v638_v57, %s3886_s29  ;;  %v4598_v9 = vmul.f32 %v4517_v49, %v4171_v16  ;;  %v5401_v19 = vmov 0.0   ;;  %v4607_v54 = vmul.f32 %v4519_v50, %v4213_v45  ;;  %v4611_v57 = vmul.f32 %v4517_v49, %v4213_v45 }
 0x1e7   : > { %3330 = vmatprep.subr.bf16.mxu0 %v5401_v19  ;;  %v4617_v52 = vmul.f32 %v4519_v50, %v4157_v7  ;;  %v4621_v24 = vmul.f32 %v4517_v49, %v4157_v7  ;;  %v4625_v44 = vmul.f32 %v4433_v41, %v4203_v38  ;;  %v4631_v62 = vmul.f32 %v4431_v40, %v4203_v38 }
 0x1e8   : > { %5402 = vst [vmem:[#allocation13_spill] sm:$0xff] %v4607_v54  ;;  %5403 = vst [vmem:[#allocation14_spill] sm:$0xff] %v4611_v57  ;;  %v4635_v16 = vmul.f32 %v4433_v41, %v4199_v37  ;;  %v4639_v7 = vmul.f32 %v4431_v40, %v4199_v37  ;;  %v5406_v1 = vpack.c.bf16 %v4468_v5, %v4464_v3  ;;  %v5430_v28 = vld [vmem:[#allocation12_spill] sm:$0xff] }
 0x1e9   : > { %3325 = vmatpush3.bf16.xpose.msra.mxu1 %v1175_v32  ;;  %v5405_v32 = vpack.c.bf16 %v4460_v2, %v4456_v61  ;;  %v4655_v57 = vmul.f32 %v4519_v50, %v4203_v38  ;;  %v4659_v14 = vmul.f32 %v4517_v49, %v4203_v38  ;;  %v4672_v3 = vmul.f32 %v4517_v49, %v4199_v37 }
 0x1ea   : > { %5404 = vst [vmem:[#allocation15_spill] sm:$0xff] %v4635_v16  ;;  %1981 = vrot.lane.b32.xlu0 %v5406_v1, %s3886_s29  ;;  %3338 = vmatprep.subr.bf16.mxu1 %v5401_v19  ;;  %v4668_v1 = vmul.f32 %v4519_v50, %v4199_v37  ;;  %v5411_v5 = vpack.c.bf16 %v4199_v37, %v4199_v37  ;;  %v1288_v37 = vsel %vm288_vm2, %v4394_v26, 0 }
 0x1eb   : > { %2032 = vrot.lane.b32.xlu1 %v5405_v32, %s3886_s29  ;;  %5407 = vst [vmem:[#allocation16_spill] sm:$0xff] %v4655_v57  ;;  %5408 = vst [vmem:[#allocation17_spill] sm:$0xff] %v4659_v14  ;;  %v4682_v61 = vmul.f32 %v4433_v41, %v4301_v0  ;;  %v4686_v2 = vmul.f32 %v4431_v40, %v4301_v0  ;;  %v4690_v54 = vmul.f32 %v4433_v41, %v4189_v29 }
 0x1ec   : > { %5409 = vst [vmem:[#allocation18_spill] sm:$0xff] %v4668_v1  ;;  %5410 = vst [vmem:[#allocation19_spill] sm:$0xff] %v4672_v3  ;;  %3319 = vmatmul.mubr.msk.bf16.vlgmr.msra.gmra.mxu0 %vm288_vm2, %v5411_v5  ;;  %v4700_v32 = vmul.f32 %v4431_v40, %v4189_v29  ;;  %v4704_v57 = vmul.f32 %v4519_v50, %v4301_v0  ;;  %v4715_v5 = vmul.f32 %v4519_v50, %v4189_v29 }
 0x1ed   : > { %5412 = vst [vmem:[#allocation20_spill] sm:$0xff] %v4682_v61  ;;  %5413 = vst [vmem:[#allocation21_spill] sm:$0xff] %v4686_v2  ;;  %3331 = vmatpush3.bf16.xpose.msra.mxu0 %v1233_v10  ;;  %3334 = vmatprep.mubr.msk.bf16.mxu0 %vm3885_vm6, %v5401_v19  ;;  %v4711_v10 = vmul.f32 %v4517_v49, %v4301_v0  ;;  %v4719_v1 = vmul.f32 %v4517_v49, %v4189_v29 }
 0x1ee   : > { %5414 = vst [vmem:[#allocation22_spill] sm:$0xff] %v4690_v54  ;;  %5415 = vst [vmem:[#allocation23_spill] sm:$0xff] %v4700_v32  ;;  %3332 = vmatprep.subr.bf16.mxu0 %v5401_v19  ;;  %v4725_v14 = vmul.f32 %v4433_v41, %v4231_v60  ;;  %v4729_v26 = vmul.f32 %v4431_v40, %v4231_v60  ;;  %v4733_v61 = vmul.f32 %v4433_v41, %v4227_v59 }
 0x1ef   : > { %5416 = vst [vmem:[#allocation24_spill] sm:$0xff] %v4715_v5  ;;  %v5420_v2 = vpack.c.bf16 %v4213_v45, %v4213_v45  ;;  %v4745_v32 = vmul.f32 %v4431_v40, %v4227_v59  ;;  %v4749_v16 = vmul.f32 %v4519_v50, %v4231_v60  ;;  %v4761_v54 = vmul.f32 %v4519_v50, %v4227_v59 }
 0x1f0   : > { %5417 = vst [vmem:[#allocation25_spill] sm:$0xff] %v4725_v14  ;;  %5418 = vst [vmem:[#allocation26_spill] sm:$0xff] %v4729_v26  ;;  %v4772_v45 = vmul.f32 %v4433_v41, %v4217_v46  ;;  %v4776_v14 = vmul.f32 %v4431_v40, %v4217_v46  ;;  %v4782_v5 = vmul.f32 %v4519_v50, %v4217_v46  ;;  %v1285_v50 = vsel %vm288_vm2, %v4402_v56, 0 }
 0x1f1   : > { %5419 = vst [vmem:[#allocation27_spill] sm:$0xff] %v4733_v61  ;;  %3327 = vmatmul.mubr.msk.bf16.vlgmr.msra.gmra.mxu1 %vm288_vm2, %v5420_v2  ;;  %v4757_v2 = vmul.f32 %v4517_v49, %v4231_v60  ;;  %v4786_v3 = vmul.f32 %v4517_v49, %v4217_v46  ;;  %v1230_v61 = vsel %vm288_vm2, %v4388_v22, 0  ;;  %v1343_v22 = vsel %vm288_vm2, %v4396_v30, 0 }
 0x1f2   : > { %3339 = vmatpush3.bf16.xpose.msra.mxu1 %v1288_v37  ;;  %3342 = vmatprep.mubr.msk.bf16.mxu1 %vm3885_vm6, %v5401_v19  ;;  %v4768_v37 = vmul.f32 %v4517_v49, %v4227_v59  ;;  %v420_v49 = vpack.c.bf16 %v4189_v29, %v4189_v29  ;;  %v1398_v56 = vsel %vm288_vm2, %v4415_v35, 0  ;;  %v1340_v29 = vsel %vm288_vm2, %v4404_v53, 0 }
 0x1f3   : > { %3340 = vmatprep.subr.bf16.mxu1 %v5401_v19  ;;  %v422_v30 = vpack.c.bf16 %v4227_v59, %v4227_v59  ;;  %v1453_v35 = vsel %vm288_vm2, %v4413_v34, 0  ;;  %v423_v53 = vpack.c.bf16 %v4301_v0, %v4301_v0  ;;  %v1450_v59 = vsel %vm288_vm2, %v4422_v36, 0 }
 0x1f4   : > { %v1505_v0 = vsel %vm288_vm2, %v4452_v58, 0  ;;  %v424_v34 = vpack.c.bf16 %v4217_v46, %v4217_v46 }
 0x1f5   : > { %3333 = vmatpush3.bf16.xpose.msra.mxu0 %v1230_v61  ;;  %v421_v61 = vpack.c.bf16 %v4203_v38, %v4203_v38  ;;  %v1395_v38 = vsel %vm288_vm2, %v4424_v6, 0  ;;  %v1508_v6 = vsel %vm288_vm2, %v4428_v11, 0  ;;  %v425_v11 = vpack.c.bf16 %v4231_v60, %v4231_v60 }
 0x1f6   : > { %3346 = vmatprep.subr.bf16.mxu0 %v5401_v19 }
 0x1fa   : > { %3341 = vmatpush3.bf16.xpose.msra.mxu1 %v1285_v50 }
 0x1fb   : > { %3354 = vmatprep.subr.bf16.mxu1 %v5401_v19 }
 0x1fc   : > { %3335 = vmatmul.mubr.msk.bf16.vlgmr.msra.gmra.mxu0 %vm288_vm2, %v420_v49 }
 0x1fd   : > { %3347 = vmatpush3.bf16.xpose.msra.mxu0 %v1343_v22  ;;  %3350 = vmatprep.mubr.msk.bf16.mxu0 %vm3885_vm6, %v5401_v19 }
 0x1fe   : > { %3348 = vmatprep.subr.bf16.mxu0 %v5401_v19 }
 0x201   : > { %3343 = vmatmul.mubr.msk.bf16.vlgmr.msra.gmra.mxu1 %vm288_vm2, %v421_v61 }
 0x202   : > { %3355 = vmatpush3.bf16.xpose.msra.mxu1 %v1398_v56  ;;  %3358 = vmatprep.mubr.msk.bf16.mxu1 %vm3885_vm6, %v5401_v19 }
 0x203   : > { %3356 = vmatprep.subr.bf16.mxu1 %v5401_v19 }
 0x205   : > { %3349 = vmatpush3.bf16.xpose.msra.mxu0 %v1340_v29 }
 0x206   : > { %3362 = vmatprep.subr.bf16.mxu0 %v5401_v19 }
 0x20a   : > { %3357 = vmatpush3.bf16.xpose.msra.mxu1 %v1395_v38 }
 0x20b   : > { %3370 = vmatprep.subr.bf16.mxu1 %v5401_v19 }
 0x20c   : > { %3351 = vmatmul.mubr.msk.bf16.vlgmr.msra.gmra.mxu0 %vm288_vm2, %v422_v30 }
 0x20d   : > { %3363 = vmatpush3.bf16.xpose.msra.mxu0 %v1453_v35  ;;  %3366 = vmatprep.mubr.msk.bf16.mxu0 %vm3885_vm6, %v5401_v19 }
 0x20e   : > { %3364 = vmatprep.subr.bf16.mxu0 %v5401_v19 }
 0x211   : > { %3359 = vmatmul.mubr.msk.bf16.vlgmr.msra.gmra.mxu1 %vm288_vm2, %v423_v53 }
 0x212   : > { %3371 = vmatpush3.bf16.xpose.msra.mxu1 %v1508_v6  ;;  %3374 = vmatprep.mubr.msk.bf16.mxu1 %vm3885_vm6, %v5401_v19 }
 0x213   : > { %3372 = vmatprep.subr.bf16.mxu1 %v5401_v19 }
 0x215   : > { %3365 = vmatpush3.bf16.xpose.msra.mxu0 %v1450_v59 }
 0x21a   : > { %3373 = vmatpush3.bf16.xpose.msra.mxu1 %v1505_v0 }
 0x21b   : > { %3410 = vmatprep.subr.bf16.mxu1 %v5401_v19 }
 0x21c   : > { %3367 = vmatmul.mubr.msk.bf16.vlgmr.msra.gmra.mxu0 %vm288_vm2, %v424_v34 }
 0x221   : > { %3375 = vmatmul.mubr.msk.bf16.vlgmr.msra.gmra.mxu1 %vm288_vm2, %v425_v11 }
 0x222   : > { %3414 = vmatprep.mubr.msk.bf16.mxu1 %vm3885_vm6, %v5401_v19 }
 0x250   : > { %v1880_v36 = vpop.permute.xlu1 %1879 }
 0x251   : > { %3411 = vmatpush3.bf16.msra.mxu1 %v1880_v36 }
 0x252   : > { %3412 = vmatprep.subr.bf16.mxu1 %v5401_v19 }
 0x254   : > { %v1931_v41 = vpop.permute.xlu1 %1930 }
 0x258   : > { %v1878_v58 = vpop.permute.xlu0 %1877 }
 0x259   : > { %3413 = vmatpush3.bf16.msra.mxu1 %v1878_v58 }
 0x25a   : > { %3418 = vmatprep.subr.bf16.mxu1 %v5401_v19 }
 0x26c   : > { %v719_v46 = vpop.f32.mrf.mxu0 }
 0x26d   : > { %v4855_v50 = vsel %vm4060_vm0, %v719_v46, -1e+30 }
 0x26e   : > { %v3256_v49 = vpop.f32.mrf.mxu0  ;;  %v1570_v60 = vsel %vm288_vm2, %v4855_v50, -inf }
 0x26f   : > { %1571 = vmax.xlane.f32.xlu0 %v1570_v60 }
 0x270   : > { %v722_v22 = vpop.f32.mrf.mxu0  ;;  %v774_v61 = vpop.f32.mrf.mxu1 }
 0x271   : > { %v4861_v56 = vsel %vm4060_vm0, %v774_v61, -1e+30 }
 0x272   : > { %v3257_v29 = vpop.f32.mrf.mxu0  ;;  %v3264_v38 = vpop.f32.mrf.mxu1  ;;  %v1573_v30 = vsel %vm288_vm2, %v4861_v56, -inf }
 0x273   : > { %1574 = vmax.xlane.f32.xlu1 %v1573_v30  ;;  %v3887_v29 = vmov 1.0  }
 0x274   : > { %v777_v35 = vpop.f32.mrf.mxu1  ;;  %3378 = vmatprep.subr.msk.mxu0 %vm4072_vm4, %v3887_v29 }
 0x275   : > { %3379 = vmatpush3.msk.msra.mxu0 %vm4072_vm4, %v3887_v29 }
 0x276   : > { %v3265_v53 = vpop.f32.mrf.mxu1  ;;  %3380 = vmatprep.subr.msk.mxu0 %vm4068_vm3, %v3887_v29 }
 0x277   : > { %3381 = vmatpush3.msk.msra.mxu0 %vm4068_vm3, %v3887_v29 }
 0x278   : > { %3382 = vmatprep.subr.msk.mxu0 %vm4084_vm5, %v3887_v29 }
 0x279   : > { %3383 = vmatpush3.msk.msra.mxu0 %vm4084_vm5, %v3887_v29 }
 0x27a   : > { %3384 = vmatprep.subr.msk.mxu0 %vm4064_vm1, %v3887_v29 }
 0x27b   : > { %3385 = vmatpush3.msk.msra.mxu0 %vm4064_vm1, %v3887_v29 }
 0x27c   : > { %v829_v6 = vpop.f32.mrf.mxu0  ;;  %3434 = vmatprep.subr.bf16.mxu0 %v5401_v19 }
 0x27d   : > { %v4867_v59 = vsel %vm4060_vm0, %v829_v6, -1e+30 }
 0x27e   : > { %v3272_v0 = vpop.f32.mrf.mxu0  ;;  %v1576_v34 = vsel %vm288_vm2, %v4867_v59, -inf }
 0x27f   : > { %1577 = vmax.xlane.f32.xlu0 %v1576_v34 }
 0x280   : > { %v832_v11 = vpop.f32.mrf.mxu0  ;;  %v884_v36 = vpop.f32.mrf.mxu1 }
 0x281   : > { %v4873_v58 = vsel %vm4060_vm0, %v884_v36, -1e+30 }
 0x282   : > { %v3273_v46 = vpop.f32.mrf.mxu0  ;;  %v3280_v49 = vpop.f32.mrf.mxu1  ;;  %v1579_v60 = vsel %vm288_vm2, %v4873_v58, -inf }
 0x283   : > { %1580 = vmax.xlane.f32.xlu0 %v1579_v60 }
 0x284   : > { %v887_v22 = vpop.f32.mrf.mxu1 }
 0x286   : > { %v3281_v61 = vpop.f32.mrf.mxu1 }
 0x28c   : > { %v939_v38 = vpop.f32.mrf.mxu0 }
 0x28d   : > { %v4893_v18 = vsel %vm4060_vm0, %v939_v38, -1e+30 }
 0x28e   : > { %v3288_v30 = vpop.f32.mrf.mxu0  ;;  %v1582_v17 = vsel %vm288_vm2, %v4893_v18, -inf }
 0x28f   : > { %1583 = vmax.xlane.f32.xlu1 %v1582_v17 }
 0x290   : > { %v942_v23 = vpop.f32.mrf.mxu0  ;;  %v994_v35 = vpop.f32.mrf.mxu1 }
 0x291   : > { %v4902_v53 = vsel %vm4060_vm0, %v994_v35, -1e+30 }
 0x292   : > { %v3289_v6 = vpop.f32.mrf.mxu0  ;;  %v3296_v0 = vpop.f32.mrf.mxu1  ;;  %v1585_v34 = vsel %vm288_vm2, %v4902_v53, -inf }
 0x293   : > { %1586 = vmax.xlane.f32.xlu0 %v1585_v34 }
 0x294   : > { %v997_v15 = vpop.f32.mrf.mxu1 }
 0x296   : > { %v3297_v11 = vpop.f32.mrf.mxu1 }
 0x29c   : > { %v1049_v36 = vpop.f32.mrf.mxu0 }
 0x29d   : > { %v4908_v46 = vsel %vm4060_vm0, %v1049_v36, -1e+30 }
 0x29e   : > { %v3304_v49 = vpop.f32.mrf.mxu0  ;;  %v1588_v60 = vsel %vm288_vm2, %v4908_v46, -inf }
 0x29f   : > { %1589 = vmax.xlane.f32.xlu1 %v1588_v60 }
 0x2a0   : > { %v1052_v22 = vpop.f32.mrf.mxu0  ;;  %v1104_v61 = vpop.f32.mrf.mxu1 }
 0x2a1   : > { %v4914_v29 = vsel %vm4060_vm0, %v1104_v61, -1e+30 }
 0x2a2   : > { %v3305_v38 = vpop.f32.mrf.mxu0  ;;  %v3312_v30 = vpop.f32.mrf.mxu1  ;;  %v1591_v17 = vsel %vm288_vm2, %v4914_v29, -inf }
 0x2a3   : > { %1592 = vmax.xlane.f32.xlu0 %v1591_v17 }
 0x2a4   : > { %v1107_v23 = vpop.f32.mrf.mxu1 }
 0x2a6   : > { %v3313_v35 = vpop.f32.mrf.mxu1 }
 0x2ac   : > { %v1159_v6 = vpop.f32.mrf.mxu0 }
 0x2ad   : > { %v4920_v0 = vsel %vm4060_vm0, %v1159_v6, -1e+30 }
 0x2ae   : > { %v3320_v34 = vpop.f32.mrf.mxu0  ;;  %v1594_v15 = vsel %vm288_vm2, %v4920_v0, -inf }
 0x2af   : > { %1595 = vmax.xlane.f32.xlu1 %v1594_v15 }
 0x2b0   : > { %v1162_v11 = vpop.f32.mrf.mxu0 }
 0x2b1   : > { %v1214_v36 = vpop.f32.mrf.mxu1 }
 0x2b2   : > { %v4926_v49 = vsel %vm4060_vm0, %v1214_v36, -1e+30  ;;  %v3321_v60 = vpop.f32.mrf.mxu0 }
 0x2b3   : > { %v3328_v22 = vpop.f32.mrf.mxu1  ;;  %v1597_v61 = vsel %vm288_vm2, %v4926_v49, -inf }
 0x2b4   : > { %1598 = vmax.xlane.f32.xlu0 %v1597_v61 }
 0x2b5   : > { %v1217_v38 = vpop.f32.mrf.mxu1 }
 0x2b7   : > { %v3329_v30 = vpop.f32.mrf.mxu1 }
 0x2bc   : > { %v1269_v17 = vpop.f32.mrf.mxu0 }
 0x2bd   : > { %v4932_v23 = vsel %vm4060_vm0, %v1269_v17, -1e+30 }
 0x2be   : > { %v3336_v35 = vpop.f32.mrf.mxu0  ;;  %v1600_v6 = vsel %vm288_vm2, %v4932_v23, -inf }
 0x2bf   : > { %1601 = vmax.xlane.f32.xlu1 %v1600_v6 }
 0x2c0   : > { %v1272_v34 = vpop.f32.mrf.mxu0 }
 0x2c1   : > { %v1324_v15 = vpop.f32.mrf.mxu1 }
 0x2c2   : > { %v4938_v11 = vsel %vm4060_vm0, %v1324_v15, -1e+30  ;;  %v3337_v36 = vpop.f32.mrf.mxu0 }
 0x2c3   : > { %v3344_v60 = vpop.f32.mrf.mxu1  ;;  %v1603_v22 = vsel %vm288_vm2, %v4938_v11, -inf }
 0x2c4   : > { %1604 = vmax.xlane.f32.xlu0 %v1603_v22 }
 0x2c5   : > { %v1327_v61 = vpop.f32.mrf.mxu1 }
 0x2c7   : > { %v3345_v38 = vpop.f32.mrf.mxu1 }
 0x2cc   : > { %v1379_v30 = vpop.f32.mrf.mxu0 }
 0x2cd   : > { %v4944_v17 = vsel %vm4060_vm0, %v1379_v30, -1e+30 }
 0x2ce   : > { %v3352_v35 = vpop.f32.mrf.mxu0  ;;  %v1606_v6 = vsel %vm288_vm2, %v4944_v17, -inf }
 0x2cf   : > { %1607 = vmax.xlane.f32.xlu1 %v1606_v6 }
 0x2d0   : > { %v1382_v34 = vpop.f32.mrf.mxu0 }
 0x2d1   : > { %v1434_v15 = vpop.f32.mrf.mxu1 }
 0x2d2   : > { %v4950_v36 = vsel %vm4060_vm0, %v1434_v15, -1e+30  ;;  %v3353_v60 = vpop.f32.mrf.mxu0 }
 0x2d3   : > { %v3360_v22 = vpop.f32.mrf.mxu1  ;;  %v1609_v61 = vsel %vm288_vm2, %v4950_v36, -inf }
 0x2d4   : > { %1610 = vmax.xlane.f32.xlu0 %v1609_v61 }
 0x2d5   : > { %v1437_v38 = vpop.f32.mrf.mxu1 }
 0x2d7   : > { %v3361_v30 = vpop.f32.mrf.mxu1 }
 0x2dc   : > { %v1489_v26 = vpop.f32.mrf.mxu0 }
 0x2dd   : > { %v4956_v35 = vsel %vm4060_vm0, %v1489_v26, -1e+30 }
 0x2de   : > { %v3368_v6 = vpop.f32.mrf.mxu0  ;;  %v1612_v34 = vsel %vm288_vm2, %v4956_v35, -inf }
 0x2df   : > { %1613 = vmax.xlane.f32.xlu1 %v1612_v34  ;;  %v5421_v6 = vpack.c.bf16 %v4556_v21, %v4552_v43  ;;  %v1929_v34 = vpop.permute.xlu1 %1928  ;;  %v5424_v43 = vpack.c.bf16 %v4572_v31, %v4568_v33  ;;  %v5427_v31 = vpack.c.bf16 %v4584_v20, %v4580_v27  ;;  %v5428_v33 = vpack.c.bf16 %v4598_v9, %v4594_v13  ;;  %v5433_v27 = vld [vmem:[#allocation13_spill] sm:$0xff] }
 0x2e0   : > { %v1492_v15 = vpop.f32.mrf.mxu0  ;;  %v5435_v13 = vpack.c.bf16 %v4621_v24, %v4617_v52  ;;  %v5437_v52 = vld [vmem:[#allocation15_spill] sm:$0xff] }
 0x2e1   : > { %v1544_v40 = vpop.f32.mrf.mxu1  ;;  %v1982_v15 = vpop.permute.xlu0 %1981  ;;  %v5438_v24 = vpack.c.bf16 %v4639_v7, %v5437_v52  ;;  %v5442_v7 = vld [vmem:[#allocation19_spill] sm:$0xff] }
 0x2e2   : > { %v4962_v60 = vsel %vm4060_vm0, %v1544_v40, -1e+30  ;;  %v3369_v22 = vpop.f32.mrf.mxu0 }
 0x2e3   : > { %v3376_v61 = vpop.f32.mrf.mxu1  ;;  %v1615_v38 = vsel %vm288_vm2, %v4962_v60, -inf  ;;  %v2033_v40 = vpop.permute.xlu1 %2032  ;;  %v5423_v22 = vpack.c.bf16 %v4564_v4, %v4560_v47  ;;  %v5426_v47 = vpack.c.bf16 %v4507_v39, %v4501_v8  ;;  %v5431_v8 = vpack.c.bf16 %v4538_v51, %v5430_v28  ;;  %v5432_v39 = vld [vmem:[#allocation14_spill] sm:$0xff]  ;;  %v5455_v28 = vld [vmem:[#allocation25_spill] sm:$0xff] }
 0x2e4   : > { %1616 = vmax.xlane.f32.xlu0 %v1615_v38  ;;  %v5434_v20 = vpack.c.bf16 %v5432_v39, %v5433_v27  ;;  %v5436_v51 = vpack.c.bf16 %v4631_v62, %v4625_v44  ;;  %v5439_v62 = vld [vmem:[#allocation17_spill] sm:$0xff]  ;;  %v5440_v44 = vld [vmem:[#allocation16_spill] sm:$0xff] }
 0x2e5   : > { %v1547_v30 = vpop.f32.mrf.mxu1 }
 0x2e7   : > { %v3377_v26 = vpop.f32.mrf.mxu1 }
 0x2f0   : > { %2030 = vrot.lane.b32.xlu1 %v5421_v6, %s3886_s29 }
 0x2f4   : > { %2134 = vrot.lane.b32.xlu1 %v5422_v12, %s3886_s29 }
 0x2f8   : > { %2132 = vrot.lane.b32.xlu1 %v5423_v22, %s3886_s29  ;;  %v1572_v61 = vpop.xlane.xlu0 %1571  ;;  %v5443_v22 = vld [vmem:[#allocation18_spill] sm:$0xff] }
 0x2f9   : > { %v1618_v38 = vsub.f32 %v4855_v50, %v1572_v61  ;;  %v5444_v61 = vpack.c.bf16 %v5442_v7, %v5443_v22 }
 0x2fa   : > { %1979 = vrot.lane.b32.xlu0 %v5424_v43, %s3886_s29 }
 0x2fb   : > { %v1634_v21 = vmul.f32 1.442695, %v1618_v38  ;;  %v5445_v38 = vld [vmem:[#allocation21_spill] sm:$0xff] }
 0x2fc   : > { %2236 = vrot.lane.b32.xlu1 %v5425_v25, %s3886_s29  ;;  %v1575_v63 = vpop.xlane.xlu1 %1574  ;;  %v5449_v25 = vld [vmem:[#allocation22_spill] sm:$0xff] }
 0x2fd   : > { %3661 = vpow2.f32 %v1634_v21  ;;  %v1619_v30 = vsub.f32 %v4861_v56, %v1575_v63  ;;  %v5448_v21 = vld [vmem:[#allocation23_spill] sm:$0xff] }
 0x2fe   : > { %2083 = vrot.lane.b32.xlu0 %v5426_v47, %s3886_s29  ;;  %v5450_v63 = vpack.c.bf16 %v5448_v21, %v5449_v25 }
 0x2ff   : > { %v1636_v4 = vmul.f32 1.442695, %v1619_v30 }
 0x300   : > { %2234 = vrot.lane.b32.xlu1 %v5427_v31, %s3886_s29 }
 0x301   : > { %3663 = vpow2.f32 %v1636_v4  ;;  %v5452_v4 = vld [vmem:[#allocation24_spill] sm:$0xff] }
 0x302   : > { %2081 = vrot.lane.b32.xlu0 %v5428_v33, %s3886_s29  ;;  %v5453_v31 = vpack.c.bf16 %v4719_v1, %v5452_v4 }
 0x304   : > { %2338 = vrot.lane.b32.xlu1 %v5429_v55, %s3886_s29  ;;  %v5454_v55 = vld [vmem:[#allocation26_spill] sm:$0xff] }
 0x306   : > { %2185 = vrot.lane.b32.xlu0 %v5431_v8, %s3886_s29  ;;  %v5456_v8 = vpack.c.bf16 %v5454_v55, %v5455_v28 }
 0x308   : > { %2336 = vrot.lane.b32.xlu1 %v5434_v20, %s3886_s29  ;;  %v1578_v50 = vpop.xlane.xlu0 %1577  ;;  %v5459_v20 = vpack.c.bf16 %v4757_v2, %v4749_v16 }
 0x309   : > { %v1620_v56 = vsub.f32 %v4867_v59, %v1578_v50 }
 0x30a   : > { %2183 = vrot.lane.b32.xlu0 %v5435_v13, %s3886_s29  ;;  %v3662_v42 = vpop.eup %3661  ;;  %v5462_v13 = vpack.c.bf16 %v4786_v3, %v4782_v5 }
 0x30b   : > { %v1638_v48 = vmul.f32 1.442695, %v1620_v56  ;;  %3386 = vmatprep.mubr.msk.f32.mxu0 %vm288_vm2, %v3662_v42  ;;  %v1859_v9 = vpack.c.bf16 %v3662_v42, %v3662_v42 }
 0x30c   : > { %2440 = vrot.lane.b32.xlu1 %v5436_v51, %s3886_s29  ;;  %v1581_v26 = vpop.xlane.xlu0 %1580 }
 0x30d   : > { %3665 = vpow2.f32 %v1638_v48  ;;  %v1621_v6 = vsub.f32 %v4873_v58, %v1581_v26  ;;  %3415 = vmatmul.mubr.msk.bf16.vlgmr.msra.gmra.mxu1 %vm288_vm2, %v1859_v9  ;;  %v5441_v58 = vpack.c.bf16 %v5439_v62, %v5440_v44 }
 0x30e   : > { %2287 = vrot.lane.b32.xlu0 %v5438_v24, %s3886_s29  ;;  %v3664_v59 = vpop.eup %3663  ;;  %3419 = vmatpush3.bf16.msra.mxu1 %v1931_v41 }
 0x30f   : > { %3422 = vmatprep.mubr.msk.bf16.mxu1 %vm3885_vm6, %v5401_v19  ;;  %v1640_v12 = vmul.f32 1.442695, %v1621_v6  ;;  %3387 = vmatmul.mubr.msk.f32.vlgmr.msra.gmra.mxu0 %vm288_vm2, %v3664_v59  ;;  %v1860_v41 = vpack.c.bf16 %v3664_v59, %v3664_v59 }
 0x310   : > { %3420 = vmatprep.subr.bf16.mxu1 %v5401_v19  ;;  %3435 = vmatpush3.bf16.msra.mxu0 %v2033_v40  ;;  %v5446_v40 = vld [vmem:[#allocation20_spill] sm:$0xff] }
 0x311   : > { %2438 = vrot.lane.b32.xlu1 %v5441_v58, %s3886_s29  ;;  %3667 = vpow2.f32 %v1640_v12  ;;  %3436 = vmatprep.subr.bf16.mxu0 %v5401_v19  ;;  %v5447_v43 = vpack.c.bf16 %v5445_v38, %v5446_v40 }
 0x312   : > { %2285 = vrot.lane.b32.xlu0 %v5444_v61, %s3886_s29  ;;  %3421 = vmatpush3.bf16.msra.mxu1 %v1929_v34  ;;  %v5451_v34 = vpack.c.bf16 %v4711_v10, %v4704_v57 }
 0x313   : > { %3426 = vmatprep.subr.bf16.mxu1 %v5401_v19 }
 0x315   : > { %2542 = vrot.lane.b32.xlu1 %v5447_v43, %s3886_s29  ;;  %3423 = vmatmul.mubr.msk.bf16.vlgmr.msra.gmra.mxu1 %vm288_vm2, %v1860_v41 }
 0x316   : > { %2389 = vrot.lane.b32.xlu0 %v5450_v63, %s3886_s29  ;;  %3427 = vmatpush3.bf16.msra.mxu1 %v1982_v15 }
 0x317   : > { %3430 = vmatprep.mubr.msk.bf16.mxu1 %vm3885_vm6, %v5401_v19  ;;  %3428 = vmatprep.subr.bf16.mxu1 %v5401_v19 }
 0x318   : > { %v1584_v30 = vpop.xlane.xlu1 %1583 }
 0x319   : > { %2540 = vrot.lane.b32.xlu1 %v5451_v34, %s3886_s29  ;;  %v1622_v47 = vsub.f32 %v4893_v18, %v1584_v30  ;;  %v5457_v18 = vld [vmem:[#allocation27_spill] sm:$0xff] }
 0x31a   : > { %2387 = vrot.lane.b32.xlu0 %v5453_v31, %s3886_s29  ;;  %v5063_v33 = vpop.eup %3665  ;;  %v5458_v1 = vpack.c.bf16 %v4745_v32, %v5457_v18  ;;  %v5461_v32 = vpack.c.bf16 %v4776_v14, %v4772_v45 }
 0x31b   : > { %v1642_v15 = vmul.f32 1.442695, %v1622_v47  ;;  %3389 = vmatprep.mubr.msk.f32.mxu0 %vm288_vm2, %v5063_v33  ;;  %v1861_v30 = vpack.c.bf16 %v5063_v33, %v5063_v33 }
 0x31c   : > { %v1587_v57 = vpop.xlane.xlu0 %1586 }
 0x31d   : > { %2644 = vrot.lane.b32.xlu1 %v5456_v8, %s3886_s29  ;;  %3669 = vpow2.f32 %v1642_v15  ;;  %v1623_v10 = vsub.f32 %v4902_v53, %v1587_v57  ;;  %v5460_v53 = vpack.c.bf16 %v4768_v37, %v4761_v54 }
 0x31e   : > { %2491 = vrot.lane.b32.xlu0 %v5458_v1, %s3886_s29  ;;  %v5076_v39 = vpop.eup %3667 }
 0x31f   : > { %v1644_v27 = vmul.f32 1.442695, %v1623_v10  ;;  %3390 = vmatmul.mubr.msk.f32.gmra.mxu0 %vm288_vm2, %v5076_v39  ;;  %v1862_v10 = vpack.c.bf16 %v5076_v39, %v5076_v39 }
 0x321   : > { %2642 = vrot.lane.b32.xlu1 %v5459_v20, %s3886_s29  ;;  %3671 = vpow2.f32 %v1644_v27 }
 0x322   : > { %2489 = vrot.lane.b32.xlu0 %v5460_v53, %s3886_s29 }
 0x326   : > { %2593 = vrot.lane.b32.xlu0 %v5461_v32, %s3886_s29 }
 0x328   : > { %v1590_v50 = vpop.xlane.xlu1 %1589 }
 0x329   : > { %v1624_v56 = vsub.f32 %v4908_v46, %v1590_v50 }
 0x32a   : > { %2591 = vrot.lane.b32.xlu0 %v5462_v13, %s3886_s29  ;;  %v5097_v16 = vpop.eup %3669 }
 0x32b   : > { %v1646_v2 = vmul.f32 1.442695, %v1624_v56  ;;  %3392 = vmatprep.mubr.msk.f32.mxu0 %vm288_vm2, %v5097_v16  ;;  %v1863_v33 = vpack.c.bf16 %v5097_v16, %v5097_v16 }
 0x32c   : > { %v1593_v54 = vpop.xlane.xlu0 %1592 }
 0x32d   : > { %3673 = vpow2.f32 %v1646_v2  ;;  %v1625_v37 = vsub.f32 %v4914_v29, %v1593_v54 }
 0x32e   : > { %v5102_v14 = vpop.eup %3671 }
 0x32f   : > { %v1648_v45 = vmul.f32 1.442695, %v1625_v37  ;;  %3393 = vmatmul.mubr.msk.f32.gmra.mxu0 %vm288_vm2, %v5102_v14  ;;  %v1864_v20 = vpack.c.bf16 %v5102_v14, %v5102_v14 }
 0x331   : > { %3675 = vpow2.f32 %v1648_v45 }
 0x338   : > { %v1596_v46 = vpop.xlane.xlu1 %1595 }
 0x339   : > { %v1626_v3 = vsub.f32 %v4920_v0, %v1596_v46 }
 0x33a   : > { %v5107_v5 = vpop.eup %3673 }
 0x33b   : > { %v1650_v42 = vmul.f32 1.442695, %v1626_v3  ;;  %3395 = vmatprep.mubr.msk.f32.mxu0 %vm288_vm2, %v5107_v5  ;;  %v1865_v18 = vpack.c.bf16 %v5107_v5, %v5107_v5 }
 0x33d   : > { %v1599_v48 = vpop.xlane.xlu0 %1598  ;;  %3677 = vpow2.f32 %v1650_v42 }
 0x33e   : > { %v1627_v29 = vsub.f32 %v4926_v49, %v1599_v48  ;;  %v5112_v9 = vpop.eup %3675 }
 0x33f   : > { %3396 = vmatmul.mubr.msk.f32.gmra.mxu0 %vm288_vm2, %v5112_v9  ;;  %v1866_v16 = vpack.c.bf16 %v5112_v9, %v5112_v9 }
 0x340   : > { %v1652_v51 = vmul.f32 1.442695, %v1627_v29 }
 0x342   : > { %3679 = vpow2.f32 %v1652_v51 }
 0x348   : > { %v1602_v26 = vpop.xlane.xlu1 %1601 }
 0x349   : > { %v1628_v0 = vsub.f32 %v4932_v23, %v1602_v26 }
 0x34a   : > { %v5117_v6 = vpop.eup %3677 }
 0x34b   : > { %v1654_v52 = vmul.f32 1.442695, %v1628_v0  ;;  %3398 = vmatprep.mubr.msk.f32.mxu0 %vm288_vm2, %v5117_v6  ;;  %v1867_v53 = vpack.c.bf16 %v5117_v6, %v5117_v6 }
 0x34d   : > { %v1605_v24 = vpop.xlane.xlu0 %1604  ;;  %3681 = vpow2.f32 %v1654_v52  ;;  %v3659_v52 = vld [vmem:[#allocation7 + $0x8] sm:$0xff]  }
 0x34e   : > { %v1629_v49 = vsub.f32 %v4938_v11, %v1605_v24  ;;  %v3660_v24 = vld [vmem:[#allocation7] sm:$0xff]  }
 0x34f   : > { %v5122_v59 = vpop.eup %3679 }
 0x350   : > { %v1656_v12 = vmul.f32 1.442695, %v1629_v49  ;;  %3399 = vmatmul.mubr.msk.f32.gmra.mxu0 %vm288_vm2, %v5122_v59  ;;  %v1868_v45 = vpack.c.bf16 %v5122_v59, %v5122_v59 }
 0x352   : > { %3683 = vpow2.f32 %v1656_v12 }
 0x358   : > { %v1608_v62 = vpop.xlane.xlu1 %1607 }
 0x359   : > { %v1630_v23 = vsub.f32 %v4944_v17, %v1608_v62 }
 0x35a   : > { %v5127_v44 = vpop.eup %3681 }
 0x35b   : > { %v1658_v58 = vmul.f32 1.442695, %v1630_v23  ;;  %3401 = vmatprep.mubr.msk.f32.mxu0 %vm288_vm2, %v5127_v44  ;;  %v1869_v2 = vpack.c.bf16 %v5127_v44, %v5127_v44 }
 0x35d   : > { %v1611_v7 = vpop.xlane.xlu0 %1610  ;;  %3685 = vpow2.f32 %v1658_v58 }
 0x35e   : > { %v1631_v11 = vsub.f32 %v4950_v36, %v1611_v7 }
 0x35f   : > { %v5132_v22 = vpop.eup %3683 }
 0x360   : > { %v1660_v61 = vmul.f32 1.442695, %v1631_v11  ;;  %3402 = vmatmul.mubr.msk.f32.gmra.mxu0 %vm288_vm2, %v5132_v22  ;;  %v1870_v48 = vpack.c.bf16 %v5132_v22, %v5132_v22 }
 0x362   : > { %3687 = vpow2.f32 %v1660_v61 }
 0x368   : > { %v1614_v41 = vpop.xlane.xlu1 %1613 }
 0x369   : > { %v1632_v17 = vsub.f32 %v4956_v35, %v1614_v41 }
 0x36a   : > { %v5137_v38 = vpop.eup %3685 }
 0x36b   : > { %v1662_v40 = vmul.f32 1.442695, %v1632_v17  ;;  %3404 = vmatprep.mubr.msk.f32.mxu0 %vm288_vm2, %v5137_v38  ;;  %v1871_v46 = vpack.c.bf16 %v5137_v38, %v5137_v38 }
 0x36c   : > { %v2031_v43 = vpop.permute.xlu1 %2030 }
 0x36d   : > { %v1617_v21 = vpop.xlane.xlu0 %1616  ;;  %3689 = vpow2.f32 %v1662_v40  ;;  %3437 = vmatpush3.bf16.msra.mxu0 %v2031_v43 }
 0x36e   : > { %v1633_v36 = vsub.f32 %v4962_v60, %v1617_v21  ;;  %3450 = vmatprep.subr.bf16.mxu0 %v5401_v19 }
 0x36f   : > { %v5142_v25 = vpop.eup %3687 }
 0x370   : > { %v1664_v63 = vmul.f32 1.442695, %v1633_v36  ;;  %3405 = vmatmul.mubr.msk.f32.gmra.mxu0 %vm288_vm2, %v5142_v25  ;;  %v2135_v35 = vpop.permute.xlu1 %2134  ;;  %v1872_v26 = vpack.c.bf16 %v5142_v25, %v5142_v25 }
 0x371   : > { %v1980_v34 = vpop.permute.xlu0 %1979 }
 0x372   : > { %3691 = vpow2.f32 %v1664_v63  ;;  %3429 = vmatpush3.bf16.msra.mxu1 %v1980_v34 }
 0x373   : > { %3442 = vmatprep.subr.bf16.mxu1 %v5401_v19 }
 0x374   : > { %v2133_v47 = vpop.permute.xlu1 %2132 }
 0x375   : > { %3431 = vmatmul.mubr.msk.bf16.vlgmr.msra.gmra.mxu1 %vm288_vm2, %v1861_v30  ;;  %v2084_v60 = vpop.permute.xlu0 %2083 }
 0x376   : > { %3443 = vmatpush3.bf16.msra.mxu1 %v2084_v60  ;;  %3446 = vmatprep.mubr.msk.bf16.mxu1 %vm3885_vm6, %v5401_v19 }
 0x377   : > { %3444 = vmatprep.subr.bf16.mxu1 %v5401_v19 }
 0x378   : > { %v2237_v31 = vpop.permute.xlu1 %2236 }
 0x379   : > { %v2082_v4 = vpop.permute.xlu0 %2081 }
 0x37a   : > { %3445 = vmatpush3.bf16.msra.mxu1 %v2082_v4  ;;  %v5154_v15 = vpop.eup %3689 }
 0x37b   : > { %3458 = vmatprep.subr.bf16.mxu1 %v5401_v19  ;;  %3407 = vmatprep.mubr.msk.f32.mxu0 %vm288_vm2, %v5154_v15  ;;  %v1873_v29 = vpack.c.bf16 %v5154_v15, %v5154_v15 }
 0x37c   : > { %v2235_v8 = vpop.permute.xlu1 %2234 }
 0x37d   : > { %3447 = vmatmul.mubr.msk.bf16.vlgmr.msra.gmra.mxu1 %vm288_vm2, %v1863_v33  ;;  %v2186_v55 = vpop.permute.xlu0 %2185 }
 0x37e   : > { %3459 = vmatpush3.bf16.msra.mxu1 %v2186_v55  ;;  %3462 = vmatprep.mubr.msk.bf16.mxu1 %vm3885_vm6, %v5401_v19 }
 0x37f   : > { %v5164_v28 = vpop.eup %3691  ;;  %3460 = vmatprep.subr.bf16.mxu1 %v5401_v19 }
 0x380   : > { %3408 = vmatmul.mubr.msk.f32.gmra.mxu0 %vm288_vm2, %v5164_v28  ;;  %v2339_v27 = vpop.permute.xlu1 %2338  ;;  %v1874_v6 = vpack.c.bf16 %v5164_v28, %v5164_v28 }
 0x381   : > { %v2184_v57 = vpop.permute.xlu0 %2183  ;;  %3438 = vmatprep.mubr.msk.bf16.mxu0 %vm3885_vm6, %v5401_v19 }
 0x382   : > { %3461 = vmatpush3.bf16.msra.mxu1 %v2184_v57 }
 0x383   : > { %3474 = vmatprep.subr.bf16.mxu1 %v5401_v19 }
 0x384   : > { %3439 = vmatmul.mubr.msk.bf16.vlgmr.msra.gmra.mxu0 %vm288_vm2, %v1862_v10  ;;  %v2337_v32 = vpop.permute.xlu1 %2336 }
 0x385   : > { %3451 = vmatpush3.bf16.msra.mxu0 %v2135_v35  ;;  %3463 = vmatmul.mubr.msk.bf16.vlgmr.msra.gmra.mxu1 %vm288_vm2, %v1865_v18  ;;  %v2288_v1 = vpop.permute.xlu0 %2287 }
 0x386   : > { %3475 = vmatpush3.bf16.msra.mxu1 %v2288_v1  ;;  %3452 = vmatprep.subr.bf16.mxu0 %v5401_v19 }
 0x387   : > { %3476 = vmatprep.subr.bf16.mxu1 %v5401_v19  ;;  %3454 = vmatprep.mubr.msk.bf16.mxu0 %vm3885_vm6, %v5401_v19 }
 0x388   : > { %3478 = vmatprep.mubr.msk.bf16.mxu1 %vm3885_vm6, %v5401_v19  ;;  %v2441_v13 = vpop.permute.xlu1 %2440 }
 0x389   : > { %3453 = vmatpush3.bf16.msra.mxu0 %v2133_v47  ;;  %v2286_v39 = vpop.permute.xlu0 %2285 }
 0x38a   : > { %3477 = vmatpush3.bf16.msra.mxu1 %v2286_v39  ;;  %3466 = vmatprep.subr.bf16.mxu0 %v5401_v19 }
 0x38b   : > { %3490 = vmatprep.subr.bf16.mxu1 %v5401_v19 }
 0x38c   : > { %3455 = vmatmul.mubr.msk.bf16.vlgmr.msra.gmra.mxu0 %vm288_vm2, %v1864_v20  ;;  %v2439_v37 = vpop.permute.xlu1 %2438 }
 0x38d   : > { %3467 = vmatpush3.bf16.msra.mxu0 %v2237_v31  ;;  %3479 = vmatmul.mubr.msk.bf16.vlgmr.msra.gmra.mxu1 %vm288_vm2, %v1867_v53  ;;  %v2390_v50 = vpop.permute.xlu0 %2389 }
 0x38e   : > { %3491 = vmatpush3.bf16.msra.mxu1 %v2390_v50  ;;  %3468 = vmatprep.subr.bf16.mxu0 %v5401_v19 }
 0x38f   : > { %3492 = vmatprep.subr.bf16.mxu1 %v5401_v19  ;;  %3470 = vmatprep.mubr.msk.bf16.mxu0 %vm3885_vm6, %v5401_v19 }
 0x390   : > { %3494 = vmatprep.mubr.msk.bf16.mxu1 %vm3885_vm6, %v5401_v19  ;;  %v2543_v5 = vpop.permute.xlu1 %2542 }
 0x391   : > { %3469 = vmatpush3.bf16.msra.mxu0 %v2235_v8  ;;  %v2388_v56 = vpop.permute.xlu0 %2387 }
 0x392   : > { %3493 = vmatpush3.bf16.msra.mxu1 %v2388_v56  ;;  %3482 = vmatprep.subr.bf16.mxu0 %v5401_v19 }
 0x393   : > { %3506 = vmatprep.subr.bf16.mxu1 %v5401_v19 }
 0x394   : > { %3471 = vmatmul.mubr.msk.bf16.vlgmr.msra.gmra.mxu0 %vm288_vm2, %v1866_v16  ;;  %v2541_v9 = vpop.permute.xlu1 %2540 }
 0x395   : > { %3483 = vmatpush3.bf16.msra.mxu0 %v2339_v27  ;;  %3495 = vmatmul.mubr.msk.bf16.vlgmr.msra.gmra.mxu1 %vm288_vm2, %v1869_v2  ;;  %v2492_v54 = vpop.permute.xlu0 %2491 }
 0x396   : > { %3507 = vmatpush3.bf16.msra.mxu1 %v2492_v54  ;;  %3484 = vmatprep.subr.bf16.mxu0 %v5401_v19 }
 0x397   : > { %3508 = vmatprep.subr.bf16.mxu1 %v5401_v19  ;;  %3486 = vmatprep.mubr.msk.bf16.mxu0 %vm3885_vm6, %v5401_v19 }
 0x398   : > { %3510 = vmatprep.mubr.msk.bf16.mxu1 %vm3885_vm6, %v5401_v19  ;;  %v2645_v51 = vpop.permute.xlu1 %2644 }
 0x399   : > { %3485 = vmatpush3.bf16.msra.mxu0 %v2337_v32  ;;  %v2490_v14 = vpop.permute.xlu0 %2489 }
 0x39a   : > { %3509 = vmatpush3.bf16.msra.mxu1 %v2490_v14  ;;  %3498 = vmatprep.subr.bf16.mxu0 %v5401_v19 }
 0x39b   : > { %3522 = vmatprep.subr.bf16.mxu1 %v5401_v19 }
 0x39c   : > { %3487 = vmatmul.mubr.msk.bf16.vlgmr.msra.gmra.mxu0 %vm288_vm2, %v1868_v45  ;;  %v2643_v0 = vpop.permute.xlu1 %2642 }
 0x39d   : > { %3499 = vmatpush3.bf16.msra.mxu0 %v2441_v13  ;;  %3511 = vmatmul.mubr.msk.bf16.vlgmr.msra.gmra.mxu1 %vm288_vm2, %v1871_v46  ;;  %v2594_v3 = vpop.permute.xlu0 %2593 }
 0x39e   : > { %3523 = vmatpush3.bf16.msra.mxu1 %v2594_v3  ;;  %3500 = vmatprep.subr.bf16.mxu0 %v5401_v19 }
 0x39f   : > { %3524 = vmatprep.subr.bf16.mxu1 %v5401_v19  ;;  %3502 = vmatprep.mubr.msk.bf16.mxu0 %vm3885_vm6, %v5401_v19 }
 0x3a0   : > { %3526 = vmatprep.mubr.msk.bf16.mxu1 %vm3885_vm6, %v5401_v19 }
 0x3a1   : > { %3501 = vmatpush3.bf16.msra.mxu0 %v2439_v37  ;;  %v2592_v42 = vpop.permute.xlu0 %2591 }
 0x3a2   : > { %3525 = vmatpush3.bf16.msra.mxu1 %v2592_v42  ;;  %3514 = vmatprep.subr.bf16.mxu0 %v5401_v19 }
 0x3a3   : > { %3538 = vmatprep.subr.bf16.mxu1 %v3659_v52 }
 0x3a4   : > { %3503 = vmatmul.mubr.msk.bf16.vlgmr.msra.gmra.mxu0 %vm288_vm2, %v1870_v48 }
 0x3a5   : > { %3515 = vmatpush3.bf16.msra.mxu0 %v2543_v5  ;;  %3527 = vmatmul.mubr.msk.bf16.vlgmr.msra.gmra.mxu1 %vm288_vm2, %v1873_v29 }
 0x3a6   : > { %3516 = vmatprep.subr.bf16.mxu0 %v5401_v19  ;;  %3518 = vmatprep.mubr.msk.bf16.mxu0 %vm3885_vm6, %v5401_v19 }
 0x3a7   : > { %3539 = vmatpush3.bf16.msra.mxu1 %v3659_v52 }
 0x3a8   : > { %3540 = vmatprep.subr.bf16.mxu1 %v3660_v24 }
 0x3a9   : > { %3517 = vmatpush3.bf16.msra.mxu0 %v2541_v9 }
 0x3aa   : > { %3530 = vmatprep.subr.bf16.mxu0 %v5401_v19 }
 0x3ab   : > { %3541 = vmatpush3.bf16.msra.mxu1 %v3660_v24 }
 0x3ac   : > { %3519 = vmatmul.mubr.msk.bf16.vlgmr.msra.gmra.mxu0 %vm288_vm2, %v1872_v26 }
 0x3ad   : > { %3531 = vmatpush3.bf16.msra.mxu0 %v2645_v51  ;;  %3534 = vmatprep.mubr.msk.bf16.mxu0 %vm3885_vm6, %v5401_v19 }
 0x3ae   : > { %3532 = vmatprep.subr.bf16.mxu0 %v5401_v19 }
 0x3b1   : > { %3533 = vmatpush3.bf16.msra.mxu0 %v2643_v0 }
 0x3b4   : > { %3535 = vmatmul.mubr.msk.bf16.vlgmr.msra.gmra.mxu0 %vm288_vm2, %v1874_v6 }
 0x3cd   : > { %v1920_v49 = vpop.f32.mrf.mxu1 }
 0x3cf   : > { %v3388_v59 = vpop.f32.mrf.mxu0  ;;  %v3416_v12 = vpop.f32.mrf.mxu1 }
 0x3d0   : > { %3693 = vrcp.f32 %v3388_v59 }
 0x3d1   : > { %v1780_v62 = vpop.f32.mrf.mxu0  ;;  %v1923_v23 = vpop.f32.mrf.mxu1 }
 0x3d2   : > { %3695 = vrcp.f32 %v1780_v62 }
 0x3d3   : > { %v3417_v19 = vpop.f32.mrf.mxu1 }
 0x3d5   : > { %v1971_v44 = vpop.f32.mrf.mxu1 }
 0x3d7   : > { %v3424_v58 = vpop.f32.mrf.mxu1 }
 0x3d9   : > { %v1974_v7 = vpop.f32.mrf.mxu1 }
 0x3db   : > { %v3425_v11 = vpop.f32.mrf.mxu1 }
 0x3dd   : > { %v3694_v22 = vpop.eup %3693 }
 0x3de   : > { %v2708_v17 = vmul.f32 %v3694_v22, %v1971_v44 }
 0x3df   : > { %v3696_v61 = vpop.eup %3695  ;;  %v3391_v40 = vpop.f32.mrf.mxu0 }
 0x3e0   : > { %v2707_v41 = vmul.f32 %v3696_v61, %v1920_v49  ;;  %3697 = vrcp.f32 %v3391_v40 }
 0x3e1   : > { %v1790_v43 = vpop.f32.mrf.mxu0 }
 0x3e2   : > { %v2723_v38 = vpack.c.bf16 %v2708_v17, %v2707_v41  ;;  %3699 = vrcp.f32 %v1790_v43 }
 0x3e4   : > { %3542 = vmatprep.mubr.msk.bf16.mxu1 %vm288_vm2, %v2723_v38 }
 0x3ed   : > { %v3698_v1 = vpop.eup %3697 }
 0x3ef   : > { %v3394_v21 = vpop.f32.mrf.mxu0  ;;  %v3700_v39 = vpop.eup %3699 }
 0x3f0   : > { %3701 = vrcp.f32 %v3394_v21 }
 0x3f1   : > { %v1800_v36 = vpop.f32.mrf.mxu0 }
 0x3f2   : > { %3703 = vrcp.f32 %v1800_v36 }
 0x3fd   : > { %v3702_v14 = vpop.eup %3701 }
 0x3ff   : > { %v3397_v25 = vpop.f32.mrf.mxu0  ;;  %v3704_v46 = vpop.eup %3703 }
 0x400   : > { %3705 = vrcp.f32 %v3397_v25 }
 0x401   : > { %v1810_v63 = vpop.f32.mrf.mxu0 }
 0x402   : > { %3707 = vrcp.f32 %v1810_v63 }
 0x40d   : > { %v3706_v52 = vpop.eup %3705 }
 0x40f   : > { %v3708_v49 = vpop.eup %3707 }
 0x410   : > { %v3400_v35 = vpop.f32.mrf.mxu0 }
 0x411   : > { %3709 = vrcp.f32 %v3400_v35 }
 0x412   : > { %v1820_v34 = vpop.f32.mrf.mxu0 }
 0x413   : > { %3711 = vrcp.f32 %v1820_v34 }
 0x41e   : > { %v3710_v61 = vpop.eup %3709 }
 0x420   : > { %v3403_v30 = vpop.f32.mrf.mxu0  ;;  %v3712_v17 = vpop.eup %3711 }
 0x421   : > { %3713 = vrcp.f32 %v3403_v30 }
 0x422   : > { %v1830_v4 = vpop.f32.mrf.mxu0 }
 0x423   : > { %3715 = vrcp.f32 %v1830_v4 }
 0x430   : > { %v5247_v15 = vpop.f32.mrf.mxu0 }
 0x431   : > { %3717 = vrcp.f32 %v5247_v15 }
 0x432   : > { %v1840_v28 = vpop.f32.mrf.mxu0 }
 0x433   : > { %3719 = vrcp.f32 %v1840_v28 }
 0x435   : > { %v2022_v47 = vpop.f32.mrf.mxu1 }
 0x436   : > { %v2709_v53 = vmul.f32 %v3700_v39, %v2022_v47  ;;  %v3714_v47 = vpop.eup %3713 }
 0x437   : > { %v3432_v60 = vpop.f32.mrf.mxu1  ;;  %v3716_v4 = vpop.eup %3715 }
 0x439   : > { %v2025_v31 = vpop.f32.mrf.mxu1 }
 0x43b   : > { %v3433_v33 = vpop.f32.mrf.mxu1 }
 0x43d   : > { %v2124_v55 = vpop.f32.mrf.mxu1 }
 0x43e   : > { %v2711_v5 = vmul.f32 %v3704_v46, %v2124_v55 }
 0x43f   : > { %v3448_v8 = vpop.f32.mrf.mxu1 }
 0x440   : > { %v5249_v57 = vpop.f32.mrf.mxu0 }
 0x441   : > { %v2127_v10 = vpop.f32.mrf.mxu1  ;;  %3721 = vrcp.f32 %v5249_v57 }
 0x442   : > { %v5251_v18 = vpop.f32.mrf.mxu0 }
 0x443   : > { %v3449_v27 = vpop.f32.mrf.mxu1  ;;  %3723 = vrcp.f32 %v5251_v18 }
 0x444   : > { %v2073_v20 = vpop.f32.mrf.mxu0 }
 0x445   : > { %v2710_v32 = vmul.f32 %v3698_v1, %v2073_v20  ;;  %v2226_v50 = vpop.f32.mrf.mxu1  ;;  %v3718_v20 = vpop.eup %3717 }
 0x446   : > { %v3440_v56 = vpop.f32.mrf.mxu0  ;;  %v2713_v12 = vmul.f32 %v3708_v49, %v2226_v50 }
 0x447   : > { %v2724_v13 = vpack.c.bf16 %v2710_v32, %v2709_v53  ;;  %v3464_v16 = vpop.f32.mrf.mxu1  ;;  %v3720_v32 = vpop.eup %3719 }
 0x448   : > { %v2076_v2 = vpop.f32.mrf.mxu0 }
 0x449   : > { %v2229_v54 = vpop.f32.mrf.mxu1  ;;  %3543 = vmatmul.mubr.msk.bf16.vlgmr.msra.gmra.mxu1 %vm288_vm2, %v2724_v13 }
 0x44a   : > { %v3441_v37 = vpop.f32.mrf.mxu0 }
 0x44b   : > { %v3465_v45 = vpop.f32.mrf.mxu1 }
 0x44c   : > { %v2175_v3 = vpop.f32.mrf.mxu0 }
 0x44d   : > { %v2712_v42 = vmul.f32 %v3702_v14, %v2175_v3  ;;  %v2328_v48 = vpop.f32.mrf.mxu1 }
 0x44e   : > { %v3456_v29 = vpop.f32.mrf.mxu0  ;;  %v2715_v40 = vmul.f32 %v3712_v17, %v2328_v48  ;;  %v3722_v18 = vpop.eup %3721 }
 0x44f   : > { %v2725_v9 = vpack.c.bf16 %v2712_v42, %v2711_v5  ;;  %v3480_v51 = vpop.f32.mrf.mxu1  ;;  %v3076_v29 = vld [vmem:[%s5355_s3] ss:$0 sm:$0xff] }
 0x450   : > { %v2178_v26 = vpop.f32.mrf.mxu0  ;;  %v3724_v37 = vpop.eup %3723 }
 0x451   : > { %v2331_v0 = vpop.f32.mrf.mxu1  ;;  %3546 = vmatprep.mubr.msk.bf16.mxu1 %vm288_vm2, %v2725_v9 }
 0x452   : > { %v3457_v6 = vpop.f32.mrf.mxu0 }
 0x453   : > { %v3481_v24 = vpop.f32.mrf.mxu1 }
 0x454   : > { %v2277_v59 = vpop.f32.mrf.mxu0 }
 0x455   : > { %v2714_v62 = vmul.f32 %v3706_v52, %v2277_v59  ;;  %v2430_v23 = vpop.f32.mrf.mxu1 }
 0x456   : > { %v3472_v19 = vpop.f32.mrf.mxu0  ;;  %v2717_v33 = vmul.f32 %v3716_v4, %v2430_v23 }
 0x457   : > { %v2726_v44 = vpack.c.bf16 %v2714_v62, %v2713_v12  ;;  %v3496_v58 = vpop.f32.mrf.mxu1 }
 0x458   : > { %v2280_v7 = vpop.f32.mrf.mxu0 }
 0x459   : > { %v2433_v11 = vpop.f32.mrf.mxu1  ;;  %3547 = vmatmul.mubr.msk.bf16.gmra.mxu1 %vm288_vm2, %v2726_v44 }
 0x45a   : > { %v3473_v22 = vpop.f32.mrf.mxu0 }
 0x45b   : > { %v3497_v41 = vpop.f32.mrf.mxu1 }
 0x45c   : > { %v2379_v38 = vpop.f32.mrf.mxu0 }
 0x45d   : > { %v2716_v43 = vmul.f32 %v3710_v61, %v2379_v38  ;;  %v2532_v21 = vpop.f32.mrf.mxu1 }
 0x45e   : > { %v3488_v36 = vpop.f32.mrf.mxu0  ;;  %v2719_v56 = vmul.f32 %v3720_v32, %v2532_v21 }
 0x45f   : > { %v2727_v25 = vpack.c.bf16 %v2716_v43, %v2715_v40  ;;  %v3512_v63 = vpop.f32.mrf.mxu1 }
 0x460   : > { %v2382_v35 = vpop.f32.mrf.mxu0 }
 0x461   : > { %v2535_v34 = vpop.f32.mrf.mxu1  ;;  %3550 = vmatprep.mubr.msk.bf16.mxu1 %vm288_vm2, %v2727_v25 }
 0x462   : > { %v3489_v30 = vpop.f32.mrf.mxu0 }
 0x463   : > { %v3513_v60 = vpop.f32.mrf.mxu1 }
 0x464   : > { %v2481_v31 = vpop.f32.mrf.mxu0 }
 0x465   : > { %v2718_v55 = vmul.f32 %v3714_v47, %v2481_v31  ;;  %v2634_v8 = vpop.f32.mrf.mxu1 }
 0x466   : > { %v3504_v10 = vpop.f32.mrf.mxu0  ;;  %v2721_v45 = vmul.f32 %v3724_v37, %v2634_v8 }
 0x467   : > { %v2728_v15 = vpack.c.bf16 %v2718_v55, %v2717_v33  ;;  %v3528_v28 = vpop.f32.mrf.mxu1 }
 0x468   : > { %v2484_v1 = vpop.f32.mrf.mxu0 }
 0x469   : > { %v2637_v27 = vpop.f32.mrf.mxu1  ;;  %3551 = vmatmul.mubr.msk.bf16.gmra.mxu1 %vm288_vm2, %v2728_v15 }
 0x46a   : > { %v3505_v39 = vpop.f32.mrf.mxu0 }
 0x46b   : > { %v3529_v53 = vpop.f32.mrf.mxu1 }
 0x46c   : > { %v2583_v50 = vpop.f32.mrf.mxu0 }
 0x46d   : > { %v2720_v13 = vmul.f32 %v3718_v20, %v2583_v50 }
 0x46e   : > { %v3520_v16 = vpop.f32.mrf.mxu0 }
 0x46f   : > { %v2729_v2 = vpack.c.bf16 %v2720_v13, %v2719_v56 }
 0x470   : > { %v2586_v54 = vpop.f32.mrf.mxu0 }
 0x471   : > { %3554 = vmatprep.mubr.msk.bf16.mxu1 %vm288_vm2, %v2729_v2 }
 0x472   : > { %v3521_v57 = vpop.f32.mrf.mxu0 }
 0x474   : > { %v2685_v14 = vpop.f32.mrf.mxu0 }
 0x475   : > { %v2722_v46 = vmul.f32 %v3722_v18, %v2685_v14 }
 0x476   : > { %v3536_v3 = vpop.f32.mrf.mxu0 }
 0x477   : > { %v2730_v5 = vpack.c.bf16 %v2722_v46, %v2721_v45 }
 0x478   : > { %v2688_v42 = vpop.f32.mrf.mxu0 }
 0x479   : > { %3555 = vmatmul.mubr.msk.bf16.gmra.mxu1 %vm288_vm2, %v2730_v5 }
 0x47a   : > { %v3537_v48 = vpop.f32.mrf.mxu0 }
 0x509   : > { %v3544_v9 = vpop.f32.mrf.mxu1 }
 0x50a   : > { %v2821_v51 = vadd.f32 %v3544_v9, %v3076_v29 }
 0x50b   : > { %v2812_v26 = vpop.f32.mrf.mxu1 }
 0x50c   : > { %2877 = vst.msk [vmem:[%s5268_s7 + $0x10] sm:$0xff] %vm288_vm2, %v2821_v51  ;;  %v2813_v0 = vadd.f32 %v3076_v29, %v2812_v26 }
 0x50d   : > { %v3545_v6 = vpop.f32.mrf.mxu1 }
 0x50e   : > { %2875 = vst.msk [vmem:[%s5268_s7] sm:$0xff] %vm288_vm2, %v2813_v0  ;;  %v2824_v52 = vadd.f32 %v3545_v6, %v3076_v29 }
 0x50f   : > { %v2815_v24 = vpop.f32.mrf.mxu1 }
 0x510   : > { %2878 = vst.msk [vmem:[%s5268_s7 + $0x18] sm:$0xff] %vm288_vm2, %v2824_v52  ;;  %v2816_v49 = vadd.f32 %v3076_v29, %v2815_v24 }
 0x512   : > { %2876 = vst.msk [vmem:[%s5268_s7 + $0x8] sm:$0xff] %vm288_vm2, %v2816_v49 }
 0x519   : > { %v3548_v59 = vpop.f32.mrf.mxu1 }
 0x51a   : > { %v2837_v12 = vadd.f32 %v3548_v59, %v3076_v29 }
 0x51b   : > { %v2828_v62 = vpop.f32.mrf.mxu1 }
 0x51c   : > { %2881 = vst.msk [vmem:[%s5268_s7 + $0x30] sm:$0xff] %vm288_vm2, %v2837_v12  ;;  %v2829_v23 = vadd.f32 %v3076_v29, %v2828_v62 }
 0x51d   : > { %v3549_v19 = vpop.f32.mrf.mxu1 }
 0x51e   : > { %2879 = vst.msk [vmem:[%s5268_s7 + $0x20] sm:$0xff] %vm288_vm2, %v2829_v23  ;;  %v2840_v44 = vadd.f32 %v3549_v19, %v3076_v29 }
 0x51f   : > { %v2831_v58 = vpop.f32.mrf.mxu1 }
 0x520   : > { %2882 = vst.msk [vmem:[%s5268_s7 + $0x38] sm:$0xff] %vm288_vm2, %v2840_v44  ;;  %v2832_v7 = vadd.f32 %v3076_v29, %v2831_v58 }
 0x522   : > { %2880 = vst.msk [vmem:[%s5268_s7 + $0x28] sm:$0xff] %vm288_vm2, %v2832_v7 }
 0x529   : > { %v3552_v11 = vpop.f32.mrf.mxu1 }
 0x52a   : > { %v2853_v22 = vadd.f32 %v3552_v11, %v3076_v29 }
 0x52b   : > { %v2844_v61 = vpop.f32.mrf.mxu1 }
 0x52c   : > { %2885 = vst.msk [vmem:[%s5268_s7 + $0x50] sm:$0xff] %vm288_vm2, %v2853_v22  ;;  %v2845_v41 = vadd.f32 %v3076_v29, %v2844_v61 }
 0x52d   : > { %v3553_v17 = vpop.f32.mrf.mxu1 }
 0x52e   : > { %2883 = vst.msk [vmem:[%s5268_s7 + $0x40] sm:$0xff] %vm288_vm2, %v2845_v41  ;;  %v2856_v38 = vadd.f32 %v3553_v17, %v3076_v29 }
 0x52f   : > { %v2847_v40 = vpop.f32.mrf.mxu1 }
 0x530   : > { %2886 = vst.msk [vmem:[%s5268_s7 + $0x58] sm:$0xff] %vm288_vm2, %v2856_v38  ;;  %v2848_v43 = vadd.f32 %v3076_v29, %v2847_v40 }
 0x532   : > { %2884 = vst.msk [vmem:[%s5268_s7 + $0x48] sm:$0xff] %vm288_vm2, %v2848_v43 }
 0x539   : > { %v3556_v21 = vpop.f32.mrf.mxu1 }
 0x53a   : > { %v2869_v36 = vadd.f32 %v3556_v21, %v3076_v29 }
 0x53b   : > { %v2860_v25 = vpop.f32.mrf.mxu1 }
 0x53c   : > { %2889 = vst.msk [vmem:[%s5268_s7 + $0x70] sm:$0xff] %vm288_vm2, %v2869_v36  ;;  %v2861_v63 = vadd.f32 %v3076_v29, %v2860_v25 }
 0x53d   : > { %v3557_v35 = vpop.f32.mrf.mxu1 }
 0x53e   : > { %2887 = vst.msk [vmem:[%s5268_s7 + $0x60] sm:$0xff] %vm288_vm2, %v2861_v63  ;;  %v2872_v34 = vadd.f32 %v3557_v35, %v3076_v29 }
 0x53f   : > { %v2863_v30 = vpop.f32.mrf.mxu1 }
 0x540   : > { %2890 = vst.msk [vmem:[%s5268_s7 + $0x78] sm:$0xff] %vm288_vm2, %v2872_v34  ;;  %v2864_v47 = vadd.f32 %v3076_v29, %v2863_v30 }
 0x542   : > { %2888 = vst.msk [vmem:[%s5268_s7 + $0x68] sm:$0xff] %vm288_vm2, %v2864_v47 }
 0x543   : > { %3818 = shalt.err (!%p3815_p9)
}
 0x544   : > { %s3819_s13 = scalar_lea.hbm %s5303_s28, 2048  ;;  %s3823_s29 = scalar_lea.hbm %s5356_s4, 4096 }
 0x545   : > { %p3820_p13 = scmp.ne.s32.totalorder %s5303_s28, %s3819_s13  ;;  %p3824_p4 = scmp.lt.s32.totalorder %s5303_s28, %s5356_s4 }
 0x546   : > { %p3825_p8 = scmp.lt.s32.totalorder %s3823_s29, %s3819_s13 }
 0x547   : > { %p3821_p5 = pnand %p3820_p13, %p5463_p10 }
 0x548   : > { %p3826_p3 = por %p3825_p8, %p3824_p4 }
 0x549   : > { %p3822_p0 = pneg %p3821_p5 }
 0x54b   : > { %p3827_p11 = pnand %p3826_p3, %p3822_p0 }
 0x54d   : > { %3830 = shalt.err (!%p3827_p11)
}
 0x54e   : > { %s3889_s7 = smov 128   ;;  %s3890_s25 = smov 8  }
 0x54f   : > { %3568 = dma.vmem_to_hbm [thread:$0]  (%p5463_p10), %s5305_s24, 2048, %s5303_s28, %s2892_s19, %s3889_s7, %s3889_s7, %s3890_s25  }
 0x550 PF: > { %s2920_s26 = sand.u32 1, %s3861_s15   ;;  %p5464_p1 = scmp.ne.s32.totalorder %s5380_s22, 0 }
 0x551   : > { %p5465_p2 = scmp.ge.s32.totalorder %s3873_s18, 2  ;;  %s2921_s27 = scalar_lea.sflag [#allocation4], %s2920_s26 }
 0x553   : > { %p3582_p6 = pnand %p5465_p2, %p5464_p1 }
 0x555   : > { %p3583_p12 = pneg %p3582_p6 }
 0x557   : > { %3856 = dma.done.wait (%p3583_p12), %s2921_s27, 2048  }
 0x558   : > { %3858 = vsyncadd (%p3583_p12), %s2921_s27, 4294965248  ;;  %p18_p7 = scmp.ge.s32.totalorder %s3988_s11, 4   ;;  %s5466_s15 = smov %s3865_s16 }
 0x559   : > { %s5467_s16 = smov %s3869_s17  ;;  %s5468_s17 = smov %s4004_s20 }
 0x55a   : > { %s5469_s18 = smov %s3988_s11  ;;  %20 = sbr.rel (!%p18_p7) target bundleno = 6 (0x6), region = 89 }
 0x55f   :  { %2926 = vsyncpa [#allocation3], 1 }
 0x560   :  { %2928 = vsyncpa [#allocation3 + $0x1], 1 }
 0x561   :  { %2929 = vsyncpa [#allocation6], 1 }
 0x562   :  { %2930 = vsyncpa [#allocation4], 1 }
 0x563   :  { %2932 = vsyncpa [#allocation4 + $0x1], 1 }

</bundles_post_ra>
